<compile_context>
chip_gen: v7x
topology: tpu7x:2x2x1
jax: 0.10.0
libtpu: 0.0.40
codegen_flags: <defaults>
</compile_context>

<pallas_src>
import jax
import jax.numpy as jnp
from jax import lax
from jax.experimental import pallas as pl
from jax.experimental.pallas import tpu as pltpu


def _probe_kernel(x_ref, w_ref, b_ref, o_ref):
    """Grid step k: o(B,N) += x_tile(B,tk) @ w_tile(N,tk)^T; bias folded into init."""
    k = pl.program_id(0)

    @pl.when(k == 0)
    def _():
        # Output block index_map is constant over K -> block stays resident in
        # VMEM; initialize it with the bias so no scratch/epilogue is needed.
        o_ref[...] = jnp.broadcast_to(b_ref[...], o_ref.shape)

    # trans-B matmul: contract last dims of (B, tk) and (N, tk) -> (B, N).
    # Native MXU form; bf16 operands, f32 accumulation.
    o_ref[...] += lax.dot_general(
        x_ref[...],
        w_ref[...],
        dimension_numbers=(((1,), (1,)), ((), ())),
        preferred_element_type=jnp.float32,
    )


def _vmem_budgets():
    """(input_footprint_budget, scoped_vmem_limit) in bytes, per-generation safe."""
    input_budget = 24 * 1024 * 1024   # v7x-safe (64 MiB physical VMEM per TC)
    vmem_limit = 32 * 1024 * 1024
    try:
        cap = getattr(pltpu.get_tpu_info(), "vmem_capacity_bytes", 0)
        if cap >= 100 * 1024 * 1024:  # v5e / v6e: 128 MiB physical VMEM
            input_budget = 80 * 1024 * 1024
            vmem_limit = 96 * 1024 * 1024
    except Exception:
        pass
    return input_budget, vmem_limit


def _pick_tk(B, K, N, *, itemsize, input_vmem_budget_bytes):
    """Largest K-tile with >=2 grid steps, 128-lane alignment, VMEM-safe.

    Double-buffered input footprint per step: 2 * (B + N) * tk * itemsize.
    Few large tiles beat many small ones: each grid step costs ~0.35 us of
    fixed overhead and this workload is HBM-read bound.
    """
    steps = 2
    while steps <= K // 128:
        if K % steps == 0:
            tk = K // steps
            if tk % 128 == 0 and 2 * (B + N) * tk * itemsize <= input_vmem_budget_bytes:
                return tk
        steps += 1
    # Fallback: minimal aligned tile (K = in_no*64*64 is always a multiple of 128).
    return 128


@jax.jit
def image_probe_forward(x, weight, bias):
    """Pallas implementation of ImageProbe.forward.

    Args:
      x:      (B, C, 64, 64) float32, NCHW like PyTorch.
      weight: (N, K) float32 with K = C*64*64 (native PyTorch nn.Linear layout).
      bias:   (N,)   float32.
    Returns:
      (B, N) float32.
    """
    B = x.shape[0]
    N, K = weight.shape
    assert x.shape[1] * x.shape[2] * x.shape[3] == K

    # torch.flatten(x, 1, -1): free contiguous view, row-major.
    # Stream both operands as bf16 (weight traffic dominates); accumulate f32.
    x_flat = x.reshape(B, K).astype(jnp.bfloat16)
    w_bf16 = weight.astype(jnp.bfloat16)
    b2d = bias.reshape(1, N).astype(jnp.float32)  # 2D for TPU layout, resident

    itemsize = 2  # bf16 streams
    input_budget, vmem_limit = _vmem_budgets()
    tk = _pick_tk(B, K, N, itemsize=itemsize, input_vmem_budget_bytes=input_budget)
    assert K % tk == 0
    grid = (K // tk,)

    cost = pl.CostEstimate(
        flops=2 * B * N * K,
        bytes_accessed=itemsize * (B * K + N * K) + 4 * (N + B * N),
        transcendentals=0,
    )

    return pl.pallas_call(
        _probe_kernel,
        out_shape=jax.ShapeDtypeStruct((B, N), jnp.float32),
        grid_spec=pltpu.PrefetchScalarGridSpec(
            num_scalar_prefetch=0,
            grid=grid,
            in_specs=[
                pl.BlockSpec((B, tk), lambda k: (0, k)),  # x_flat K-tile (bf16)
                pl.BlockSpec((N, tk), lambda k: (0, k)),  # weight K-tile (native N,K, bf16)
                pl.BlockSpec((1, N), lambda k: (0, 0)),   # bias (resident, f32)
            ],
            out_specs=pl.BlockSpec((B, N), lambda k: (0, 0)),  # resident f32 accumulator
        ),
        compiler_params=pltpu.CompilerParams(
            dimension_semantics=("arbitrary",),  # K is a reduction axis
            vmem_limit_bytes=vmem_limit,
        ),
        cost_estimate=cost,
    )(x_flat, w_bf16, b2d)


if __name__ == "__main__":
    # Spatial is fixed at 64x64 by the Linear's in_features = in_no * 64 * 64.
    B, C, H, W = 2, 4, 64, 64
    N_OUT = 32
    K = C * H * W

    key = jax.random.PRNGKey(0)
    kx, kw, kb = jax.random.split(key, 3)

    x = jax.random.normal(kx, (B, C, H, W), dtype=jnp.float32)
    # Deterministic parameter init (synthetic, PyTorch nn.Linear layout/shapes).
    bound = 1.0 / jnp.sqrt(K)
    weight = jax.random.uniform(kw, (N_OUT, K), jnp.float32, -bound, bound)
    bias = jax.random.uniform(kb, (N_OUT,), jnp.float32, -bound, bound)

    y = image_probe_forward(x, weight, bias)
    y = jax.block_until_ready(y)
    assert y.shape == (B, N_OUT)

    # Exact-math reference on the bf16-quantized streams (kernel uses f32 acc).
    x_q = x.reshape(B, K).astype(jnp.bfloat16).astype(jnp.float32)
    w_q = weight.astype(jnp.bfloat16).astype(jnp.float32)
    y_ref_q = x_q @ w_q.T + bias
    assert jnp.allclose(y, y_ref_q, atol=1e-3, rtol=1e-3)

    # Loose fidelity check vs. the full-f32 nn.Linear reference (bf16 stream quantization).
    y_ref_f32 = x.reshape(B, K) @ weight.T + bias
    assert jnp.allclose(y, y_ref_f32, atol=5e-2, rtol=5e-2)

    print("KERNEL_OK")
</pallas_src>

<mosaic_0001>
module attributes {stable_mosaic.version = 11 : i64} {
  func.func @_probe_kernel(%arg0: i32, %arg1: memref<2x8192xbf16, #tpu.memory_space<vmem>>, %arg2: memref<32x8192xbf16, #tpu.memory_space<vmem>>, %arg3: memref<1x32xf32, #tpu.memory_space<vmem>>, %arg4: memref<2x32xf32, #tpu.memory_space<vmem>>) attributes {dimension_semantics = [#tpu.dimension_semantics<arbitrary>], iteration_bounds = array<i64: 2>, scalar_prefetch = 0 : i64, scratch_operands = 0 : i64, tpu.core_type = #tpu.core_type<tc>, window_params = [{transform_indices = @transform_0, window_bounds = array<i64: 2, 8192>}, {transform_indices = @transform_1, window_bounds = array<i64: 32, 8192>}, {pipeline_mode = #tpu.pipeline_mode<synchronous>, transform_indices = @transform_2, window_bounds = array<i64: 1, 32>}, {pipeline_mode = #tpu.pipeline_mode<synchronous>, transform_indices = @transform_3, window_bounds = array<i64: 2, 32>}]} {
    %c0_i32 = arith.constant 0 : i32
    %0 = arith.cmpi eq, %arg0, %c0_i32 : i32
    %1 = arith.extui %0 : i1 to i32
    %c0_i32_0 = arith.constant 0 : i32
    %2 = arith.cmpi ne, %1, %c0_i32_0 : i32
    scf.if %2 {
      %c0_8 = arith.constant 0 : index
      %c0_9 = arith.constant 0 : index
      %9 = vector.load %arg3[%c0_8, %c0_9] : memref<1x32xf32, #tpu.memory_space<vmem>>, vector<1x32xf32>
      %10 = vector.shape_cast %9 : vector<1x32xf32> to vector<1x32xf32>
      %11 = vector.broadcast %10 : vector<1x32xf32> to vector<2x32xf32>
      %c0_10 = arith.constant 0 : index
      %c0_11 = arith.constant 0 : index
      %12 = vector.load %arg4[%c0_10, %c0_11] : memref<2x32xf32, #tpu.memory_space<vmem>>, vector<2x32xf32>
      tpu.vector_store %arg4[%c0_10, %c0_11], %11 {strides = array<i32>} : memref<2x32xf32, #tpu.memory_space<vmem>>, vector<2x32xf32>,
    } else {
    }
    %c0 = arith.constant 0 : index
    %c0_1 = arith.constant 0 : index
    %3 = vector.load %arg4[%c0, %c0_1] : memref<2x32xf32, #tpu.memory_space<vmem>>, vector<2x32xf32>
    %c0_2 = arith.constant 0 : index
    %c0_3 = arith.constant 0 : index
    %4 = vector.load %arg1[%c0_2, %c0_3] : memref<2x8192xbf16, #tpu.memory_space<vmem>>, vector<2x8192xbf16>
    %c0_4 = arith.constant 0 : index
    %c0_5 = arith.constant 0 : index
    %5 = vector.load %arg2[%c0_4, %c0_5] : memref<32x8192xbf16, #tpu.memory_space<vmem>>, vector<32x8192xbf16>
    %cst = arith.constant dense<0.000000e+00> : vector<2x32xf32>
    %6 = tpu.matmul %4, %5, %cst {dimension_numbers = #tpu.dot_dimension_numbers<[1], [1], [0], [0], [0, 0, 1, 0], [], []>} : vector<2x8192xbf16>, vector<32x8192xbf16>, vector<2x32xf32> -> vector<2x32xf32>
    %7 = arith.addf %3, %6 : vector<2x32xf32>
    %c0_6 = arith.constant 0 : index
    %c0_7 = arith.constant 0 : index
    %8 = vector.load %arg4[%c0_6, %c0_7] : memref<2x32xf32, #tpu.memory_space<vmem>>, vector<2x32xf32>
    tpu.vector_store %arg4[%c0_6, %c0_7], %7 {strides = array<i32>} : memref<2x32xf32, #tpu.memory_space<vmem>>, vector<2x32xf32>,
    return
  }
  func.func @transform_0(%arg0: i32) -> (i32, i32) {
    %c0_i32 = arith.constant 0 : i32
    %c0_i32_0 = arith.constant 0 : i32
    return %c0_i32, %arg0 : i32, i32
  }
  func.func @transform_1(%arg0: i32) -> (i32, i32) {
    %c0_i32 = arith.constant 0 : i32
    %c0_i32_0 = arith.constant 0 : i32
    return %c0_i32, %arg0 : i32, i32
  }
  func.func @transform_2(%arg0: i32) -> (i32, i32) {
    %c0_i32 = arith.constant 0 : i32
    %c0_i32_0 = arith.constant 0 : i32
    %c0_i32_1 = arith.constant 0 : i32
    return %c0_i32, %c0_i32_0 : i32, i32
  }
  func.func @transform_3(%arg0: i32) -> (i32, i32) {
    %c0_i32 = arith.constant 0 : i32
    %c0_i32_0 = arith.constant 0 : i32
    %c0_i32_1 = arith.constant 0 : i32
    return %c0_i32, %c0_i32_0 : i32, i32
  }
}

</mosaic_0001>

<bundles_post_ra>
// kernel: image_probe_forward.1
= control target key start
LH: loop header
LB: loop body
LE: loop exit
PB: predicated region body
PF: predicated region fallthrough
CT: control target
= control target key end

     0   :  { %8 = vsyncpa [#allocation4], 0  ;;  %s3310_s12 = smov 0   ;;  %s3312_s13 = smov 0   ;;  %s3840_s0 = inlined_call_operand.vmem [shape: bf16[2,16384], index: 0, kind: input, shape index: {}]   ;;  %s3841_s1 = inlined_call_operand.vmem [shape: bf16[32,16384], index: 1, kind: input, shape index: {}]   ;;  %s3842_s2 = inlined_call_operand.vmem [shape: f32[1,32], index: 2, kind: input, shape index: {}]   ;;  %s3843_s3 = inlined_call_operand.hbm [shape: f32[2,32], index: 3, kind: output, shape index: {}]  }
   0x1   :  { %s3314_s14 = smov 0  }
   0x2 LB: > { %s3326_s15 = sadd.s32 4294967295, %s3286_s14   ;;  %s3329_s16 = sadd.s32 1, %s3286_s14   ;;  %s3286_s14 = sphi %s3314_s14, %s3846_s14   ;;  %s3282_s13 = sphi %s3312_s13, %s3845_s13   ;;  %s3278_s12 = sphi %s3310_s12, %s3844_s12  }
   0x3   : > { %s44_s17 = ssub.s32 %s3286_s14, %s3329_s16  ;;  %s47_s18 = sadd.s32 1, %s3282_s13 }
   0x4   : > { %p45_p0 = scmp.eq.s32.totalorder %s44_s17, 0  ;;  %p54_p1 = scmp.ne.s32.totalorder %s3282_s13, %s3278_s12 }
   0x5   : > { %p55_p2 = scmp.eq.s32.totalorder %s3286_s14, 0  ;;  %p3052_p4 = scmp.ge.s32.totalorder %s3286_s14, 2 }
   0x6   : > { %s3338_s19 = scalar_select %p45_p0, %s3282_s13, %s47_s18  }
   0x7   : > { %p56_p3 = por %p55_p2, %p54_p1  ;;  %125 = sbr.rel (%p3052_p4) target bundleno = 82 (0x52), region = 20 }
   0xe   : > { %136 = sbr.rel (!%p56_p3) target bundleno = 82 (0x52), region = 28  ;;  %s138_s20 = sand.u32 (%p56_p3), 1, %s3282_s13  }
   0xf   : > { %s3193_s21 = sshll.u32 (%p56_p3), %s3286_s14, 8  ;;  %s3053_s22 = sshll.u32 (%p56_p3), %s138_s20, 10 }
  0x10   : > { %s3346_s25 = scalar_lea.vmem (%p56_p3), %s3841_s1, %s3193_s21  ;;  %s3351_s26 = scalar_lea.vmem (%p56_p3), [#allocation2], %s3053_s22 }
  0x11   : > { %v156_v0 = vld [vmem:[%s3346_s25] sm:$0xff] (%p56_p3)  ;;  %v158_v1 = vld [vmem:[%s3346_s25 + $0x8] sm:$0xff] (%p56_p3)  ;;  %v160_v2 = vld [vmem:[%s3346_s25 + $0x10] sm:$0xff] (%p56_p3) }
  0x12   : > { %157 = vst [vmem:[%s3351_s26] sm:$0xff] (%p56_p3), %v156_v0  ;;  %159 = vst [vmem:[%s3351_s26 + $0x8] sm:$0xff] (%p56_p3), %v158_v1  ;;  %v162_v3 = vld [vmem:[%s3346_s25 + $0x18] sm:$0xff] (%p56_p3)  ;;  %v164_v4 = vld [vmem:[%s3346_s25 + $0x20] sm:$0xff] (%p56_p3) }
  0x13   : > { %161 = vst [vmem:[%s3351_s26 + $0x10] sm:$0xff] (%p56_p3), %v160_v2  ;;  %v166_v5 = vld [vmem:[%s3346_s25 + $0x28] sm:$0xff] (%p56_p3)  ;;  %163 = vst [vmem:[%s3351_s26 + $0x18] sm:$0xff] (%p56_p3), %v162_v3  ;;  %v168_v6 = vld [vmem:[%s3346_s25 + $0x30] sm:$0xff] (%p56_p3) }
  0x14   : > { %165 = vst [vmem:[%s3351_s26 + $0x20] sm:$0xff] (%p56_p3), %v164_v4  ;;  %167 = vst [vmem:[%s3351_s26 + $0x28] sm:$0xff] (%p56_p3), %v166_v5  ;;  %v170_v7 = vld [vmem:[%s3346_s25 + $0x38] sm:$0xff] (%p56_p3)  ;;  %v172_v8 = vld [vmem:[%s3346_s25 + $0x40] sm:$0xff] (%p56_p3) }
  0x15   : > { %169 = vst [vmem:[%s3351_s26 + $0x30] sm:$0xff] %v168_v6  ;;  %171 = vst [vmem:[%s3351_s26 + $0x38] sm:$0xff] %v170_v7  ;;  %v174_v9 = vld [vmem:[%s3346_s25 + $0x48] sm:$0xff]  ;;  %v176_v10 = vld [vmem:[%s3346_s25 + $0x50] sm:$0xff] }
  0x16   : > { %173 = vst [vmem:[%s3351_s26 + $0x40] sm:$0xff] %v172_v8  ;;  %v178_v11 = vld [vmem:[%s3346_s25 + $0x58] sm:$0xff]  ;;  %175 = vst [vmem:[%s3351_s26 + $0x48] sm:$0xff] %v174_v9  ;;  %v180_v12 = vld [vmem:[%s3346_s25 + $0x60] sm:$0xff] }
  0x17   : > { %177 = vst [vmem:[%s3351_s26 + $0x50] sm:$0xff] %v176_v10  ;;  %179 = vst [vmem:[%s3351_s26 + $0x58] sm:$0xff] %v178_v11  ;;  %v182_v13 = vld [vmem:[%s3346_s25 + $0x68] sm:$0xff]  ;;  %v184_v14 = vld [vmem:[%s3346_s25 + $0x70] sm:$0xff] }
  0x18   : > { %181 = vst [vmem:[%s3351_s26 + $0x60] sm:$0xff] %v180_v12  ;;  %183 = vst [vmem:[%s3351_s26 + $0x68] sm:$0xff] %v182_v13  ;;  %v186_v15 = vld [vmem:[%s3346_s25 + $0x78] sm:$0xff]  ;;  %v188_v16 = vld [vmem:[%s3346_s25 + $0x80] sm:$0xff] }
  0x19   : > { %185 = vst [vmem:[%s3351_s26 + $0x70] sm:$0xff] %v184_v14  ;;  %v190_v17 = vld [vmem:[%s3346_s25 + $0x88] sm:$0xff]  ;;  %187 = vst [vmem:[%s3351_s26 + $0x78] sm:$0xff] %v186_v15  ;;  %v192_v18 = vld [vmem:[%s3346_s25 + $0x90] sm:$0xff] }
  0x1a   : > { %189 = vst [vmem:[%s3351_s26 + $0x80] sm:$0xff] %v188_v16  ;;  %191 = vst [vmem:[%s3351_s26 + $0x88] sm:$0xff] %v190_v17  ;;  %v194_v19 = vld [vmem:[%s3346_s25 + $0x98] sm:$0xff]  ;;  %v196_v20 = vld [vmem:[%s3346_s25 + $0xa0] sm:$0xff] }
  0x1b   : > { %193 = vst [vmem:[%s3351_s26 + $0x90] sm:$0xff] %v192_v18  ;;  %195 = vst [vmem:[%s3351_s26 + $0x98] sm:$0xff] %v194_v19  ;;  %v198_v21 = vld [vmem:[%s3346_s25 + $0xa8] sm:$0xff]  ;;  %v200_v22 = vld [vmem:[%s3346_s25 + $0xb0] sm:$0xff] }
  0x1c   : > { %197 = vst [vmem:[%s3351_s26 + $0xa0] sm:$0xff] %v196_v20  ;;  %v202_v23 = vld [vmem:[%s3346_s25 + $0xb8] sm:$0xff]  ;;  %199 = vst [vmem:[%s3351_s26 + $0xa8] sm:$0xff] %v198_v21  ;;  %v204_v24 = vld [vmem:[%s3346_s25 + $0xc0] sm:$0xff] }
  0x1d   : > { %201 = vst [vmem:[%s3351_s26 + $0xb0] sm:$0xff] %v200_v22  ;;  %203 = vst [vmem:[%s3351_s26 + $0xb8] sm:$0xff] %v202_v23  ;;  %v206_v25 = vld [vmem:[%s3346_s25 + $0xc8] sm:$0xff]  ;;  %v208_v26 = vld [vmem:[%s3346_s25 + $0xd0] sm:$0xff] }
  0x1e   : > { %205 = vst [vmem:[%s3351_s26 + $0xc0] sm:$0xff] %v204_v24  ;;  %207 = vst [vmem:[%s3351_s26 + $0xc8] sm:$0xff] %v206_v25  ;;  %v210_v27 = vld [vmem:[%s3346_s25 + $0xd8] sm:$0xff]  ;;  %v212_v28 = vld [vmem:[%s3346_s25 + $0xe0] sm:$0xff] }
  0x1f   : > { %209 = vst [vmem:[%s3351_s26 + $0xd0] sm:$0xff] %v208_v26  ;;  %v214_v29 = vld [vmem:[%s3346_s25 + $0xe8] sm:$0xff]  ;;  %211 = vst [vmem:[%s3351_s26 + $0xd8] sm:$0xff] %v210_v27  ;;  %v216_v30 = vld [vmem:[%s3346_s25 + $0xf0] sm:$0xff] }
  0x20   : > { %213 = vst [vmem:[%s3351_s26 + $0xe0] sm:$0xff] %v212_v28  ;;  %215 = vst [vmem:[%s3351_s26 + $0xe8] sm:$0xff] %v214_v29  ;;  %v218_v31 = vld [vmem:[%s3346_s25 + $0xf8] sm:$0xff]  ;;  %v220_v32 = vld [vmem:[%s3346_s25 + $0x200] sm:$0xff] }
  0x21   : > { %217 = vst [vmem:[%s3351_s26 + $0xf0] sm:$0xff] %v216_v30  ;;  %219 = vst [vmem:[%s3351_s26 + $0xf8] sm:$0xff] %v218_v31  ;;  %v222_v33 = vld [vmem:[%s3346_s25 + $0x208] sm:$0xff]  ;;  %v224_v34 = vld [vmem:[%s3346_s25 + $0x210] sm:$0xff] }
  0x22   : > { %221 = vst [vmem:[%s3351_s26 + $0x100] sm:$0xff] %v220_v32  ;;  %v226_v35 = vld [vmem:[%s3346_s25 + $0x218] sm:$0xff]  ;;  %223 = vst [vmem:[%s3351_s26 + $0x108] sm:$0xff] %v222_v33  ;;  %v228_v36 = vld [vmem:[%s3346_s25 + $0x220] sm:$0xff] }
  0x23   : > { %225 = vst [vmem:[%s3351_s26 + $0x110] sm:$0xff] %v224_v34  ;;  %227 = vst [vmem:[%s3351_s26 + $0x118] sm:$0xff] %v226_v35  ;;  %v230_v37 = vld [vmem:[%s3346_s25 + $0x228] sm:$0xff]  ;;  %v232_v38 = vld [vmem:[%s3346_s25 + $0x230] sm:$0xff] }
  0x24   : > { %229 = vst [vmem:[%s3351_s26 + $0x120] sm:$0xff] %v228_v36  ;;  %231 = vst [vmem:[%s3351_s26 + $0x128] sm:$0xff] %v230_v37  ;;  %v234_v39 = vld [vmem:[%s3346_s25 + $0x238] sm:$0xff]  ;;  %v236_v40 = vld [vmem:[%s3346_s25 + $0x240] sm:$0xff] }
  0x25   : > { %233 = vst [vmem:[%s3351_s26 + $0x130] sm:$0xff] %v232_v38  ;;  %v238_v41 = vld [vmem:[%s3346_s25 + $0x248] sm:$0xff]  ;;  %235 = vst [vmem:[%s3351_s26 + $0x138] sm:$0xff] %v234_v39  ;;  %v240_v42 = vld [vmem:[%s3346_s25 + $0x250] sm:$0xff] }
  0x26   : > { %237 = vst [vmem:[%s3351_s26 + $0x140] sm:$0xff] %v236_v40  ;;  %239 = vst [vmem:[%s3351_s26 + $0x148] sm:$0xff] %v238_v41  ;;  %v242_v43 = vld [vmem:[%s3346_s25 + $0x258] sm:$0xff]  ;;  %v244_v44 = vld [vmem:[%s3346_s25 + $0x260] sm:$0xff] }
  0x27   : > { %241 = vst [vmem:[%s3351_s26 + $0x150] sm:$0xff] %v240_v42  ;;  %243 = vst [vmem:[%s3351_s26 + $0x158] sm:$0xff] %v242_v43  ;;  %v246_v45 = vld [vmem:[%s3346_s25 + $0x268] sm:$0xff]  ;;  %v248_v46 = vld [vmem:[%s3346_s25 + $0x270] sm:$0xff] }
  0x28   : > { %245 = vst [vmem:[%s3351_s26 + $0x160] sm:$0xff] %v244_v44  ;;  %v250_v47 = vld [vmem:[%s3346_s25 + $0x278] sm:$0xff]  ;;  %247 = vst [vmem:[%s3351_s26 + $0x168] sm:$0xff] %v246_v45  ;;  %v252_v48 = vld [vmem:[%s3346_s25 + $0x280] sm:$0xff] }
  0x29   : > { %249 = vst [vmem:[%s3351_s26 + $0x170] sm:$0xff] %v248_v46  ;;  %251 = vst [vmem:[%s3351_s26 + $0x178] sm:$0xff] %v250_v47  ;;  %v254_v49 = vld [vmem:[%s3346_s25 + $0x288] sm:$0xff]  ;;  %v256_v50 = vld [vmem:[%s3346_s25 + $0x290] sm:$0xff] }
  0x2a   : > { %253 = vst [vmem:[%s3351_s26 + $0x180] sm:$0xff] %v252_v48  ;;  %255 = vst [vmem:[%s3351_s26 + $0x188] sm:$0xff] %v254_v49  ;;  %v258_v51 = vld [vmem:[%s3346_s25 + $0x298] sm:$0xff]  ;;  %v260_v52 = vld [vmem:[%s3346_s25 + $0x2a0] sm:$0xff] }
  0x2b   : > { %257 = vst [vmem:[%s3351_s26 + $0x190] sm:$0xff] %v256_v50  ;;  %v262_v53 = vld [vmem:[%s3346_s25 + $0x2a8] sm:$0xff]  ;;  %259 = vst [vmem:[%s3351_s26 + $0x198] sm:$0xff] %v258_v51  ;;  %v264_v54 = vld [vmem:[%s3346_s25 + $0x2b0] sm:$0xff] }
  0x2c   : > { %261 = vst [vmem:[%s3351_s26 + $0x1a0] sm:$0xff] %v260_v52  ;;  %263 = vst [vmem:[%s3351_s26 + $0x1a8] sm:$0xff] %v262_v53  ;;  %v266_v55 = vld [vmem:[%s3346_s25 + $0x2b8] sm:$0xff]  ;;  %v268_v56 = vld [vmem:[%s3346_s25 + $0x2c0] sm:$0xff] }
  0x2d   : > { %265 = vst [vmem:[%s3351_s26 + $0x1b0] sm:$0xff] %v264_v54  ;;  %267 = vst [vmem:[%s3351_s26 + $0x1b8] sm:$0xff] %v266_v55  ;;  %v270_v57 = vld [vmem:[%s3346_s25 + $0x2c8] sm:$0xff]  ;;  %v272_v58 = vld [vmem:[%s3346_s25 + $0x2d0] sm:$0xff] }
  0x2e   : > { %269 = vst [vmem:[%s3351_s26 + $0x1c0] sm:$0xff] %v268_v56  ;;  %v274_v59 = vld [vmem:[%s3346_s25 + $0x2d8] sm:$0xff]  ;;  %271 = vst [vmem:[%s3351_s26 + $0x1c8] sm:$0xff] %v270_v57  ;;  %v276_v60 = vld [vmem:[%s3346_s25 + $0x2e0] sm:$0xff] }
  0x2f   : > { %273 = vst [vmem:[%s3351_s26 + $0x1d0] sm:$0xff] %v272_v58  ;;  %275 = vst [vmem:[%s3351_s26 + $0x1d8] sm:$0xff] %v274_v59  ;;  %v278_v61 = vld [vmem:[%s3346_s25 + $0x2e8] sm:$0xff]  ;;  %v280_v62 = vld [vmem:[%s3346_s25 + $0x2f0] sm:$0xff] }
  0x30   : > { %277 = vst [vmem:[%s3351_s26 + $0x1e0] sm:$0xff] %v276_v60  ;;  %279 = vst [vmem:[%s3351_s26 + $0x1e8] sm:$0xff] %v278_v61  ;;  %v282_v63 = vld [vmem:[%s3346_s25 + $0x2f8] sm:$0xff]  ;;  %v284_v0 = vld [vmem:[%s3346_s25 + $0x400] sm:$0xff] }
  0x31   : > { %281 = vst [vmem:[%s3351_s26 + $0x1f0] sm:$0xff] %v280_v62  ;;  %v286_v1 = vld [vmem:[%s3346_s25 + $0x408] sm:$0xff]  ;;  %283 = vst [vmem:[%s3351_s26 + $0x1f8] sm:$0xff] %v282_v63  ;;  %v288_v2 = vld [vmem:[%s3346_s25 + $0x410] sm:$0xff] }
  0x32   : > { %285 = vst [vmem:[%s3351_s26 + $0x200] sm:$0xff] %v284_v0  ;;  %287 = vst [vmem:[%s3351_s26 + $0x208] sm:$0xff] %v286_v1  ;;  %v290_v3 = vld [vmem:[%s3346_s25 + $0x418] sm:$0xff]  ;;  %v292_v4 = vld [vmem:[%s3346_s25 + $0x420] sm:$0xff] }
  0x33   : > { %289 = vst [vmem:[%s3351_s26 + $0x210] sm:$0xff] %v288_v2  ;;  %291 = vst [vmem:[%s3351_s26 + $0x218] sm:$0xff] %v290_v3  ;;  %v294_v5 = vld [vmem:[%s3346_s25 + $0x428] sm:$0xff]  ;;  %v296_v6 = vld [vmem:[%s3346_s25 + $0x430] sm:$0xff] }
  0x34   : > { %293 = vst [vmem:[%s3351_s26 + $0x220] sm:$0xff] %v292_v4  ;;  %v298_v7 = vld [vmem:[%s3346_s25 + $0x438] sm:$0xff]  ;;  %295 = vst [vmem:[%s3351_s26 + $0x228] sm:$0xff] %v294_v5  ;;  %v300_v8 = vld [vmem:[%s3346_s25 + $0x440] sm:$0xff] }
  0x35   : > { %297 = vst [vmem:[%s3351_s26 + $0x230] sm:$0xff] %v296_v6  ;;  %299 = vst [vmem:[%s3351_s26 + $0x238] sm:$0xff] %v298_v7  ;;  %v302_v9 = vld [vmem:[%s3346_s25 + $0x448] sm:$0xff]  ;;  %v304_v10 = vld [vmem:[%s3346_s25 + $0x450] sm:$0xff] }
  0x36   : > { %301 = vst [vmem:[%s3351_s26 + $0x240] sm:$0xff] %v300_v8  ;;  %303 = vst [vmem:[%s3351_s26 + $0x248] sm:$0xff] %v302_v9  ;;  %v306_v11 = vld [vmem:[%s3346_s25 + $0x458] sm:$0xff]  ;;  %v308_v12 = vld [vmem:[%s3346_s25 + $0x460] sm:$0xff] }
  0x37   : > { %305 = vst [vmem:[%s3351_s26 + $0x250] sm:$0xff] %v304_v10  ;;  %v310_v13 = vld [vmem:[%s3346_s25 + $0x468] sm:$0xff]  ;;  %307 = vst [vmem:[%s3351_s26 + $0x258] sm:$0xff] %v306_v11  ;;  %v312_v14 = vld [vmem:[%s3346_s25 + $0x470] sm:$0xff] }
  0x38   : > { %309 = vst [vmem:[%s3351_s26 + $0x260] sm:$0xff] %v308_v12  ;;  %311 = vst [vmem:[%s3351_s26 + $0x268] sm:$0xff] %v310_v13  ;;  %v314_v15 = vld [vmem:[%s3346_s25 + $0x478] sm:$0xff]  ;;  %v316_v16 = vld [vmem:[%s3346_s25 + $0x480] sm:$0xff] }
  0x39   : > { %313 = vst [vmem:[%s3351_s26 + $0x270] sm:$0xff] %v312_v14  ;;  %315 = vst [vmem:[%s3351_s26 + $0x278] sm:$0xff] %v314_v15  ;;  %v318_v17 = vld [vmem:[%s3346_s25 + $0x488] sm:$0xff]  ;;  %v320_v18 = vld [vmem:[%s3346_s25 + $0x490] sm:$0xff] }
  0x3a   : > { %317 = vst [vmem:[%s3351_s26 + $0x280] sm:$0xff] %v316_v16  ;;  %v322_v19 = vld [vmem:[%s3346_s25 + $0x498] sm:$0xff]  ;;  %319 = vst [vmem:[%s3351_s26 + $0x288] sm:$0xff] %v318_v17  ;;  %v324_v20 = vld [vmem:[%s3346_s25 + $0x4a0] sm:$0xff] }
  0x3b   : > { %321 = vst [vmem:[%s3351_s26 + $0x290] sm:$0xff] %v320_v18  ;;  %323 = vst [vmem:[%s3351_s26 + $0x298] sm:$0xff] %v322_v19  ;;  %v326_v21 = vld [vmem:[%s3346_s25 + $0x4a8] sm:$0xff]  ;;  %v328_v22 = vld [vmem:[%s3346_s25 + $0x4b0] sm:$0xff] }
  0x3c   : > { %325 = vst [vmem:[%s3351_s26 + $0x2a0] sm:$0xff] %v324_v20  ;;  %327 = vst [vmem:[%s3351_s26 + $0x2a8] sm:$0xff] %v326_v21  ;;  %v330_v23 = vld [vmem:[%s3346_s25 + $0x4b8] sm:$0xff]  ;;  %v332_v24 = vld [vmem:[%s3346_s25 + $0x4c0] sm:$0xff] }
  0x3d   : > { %329 = vst [vmem:[%s3351_s26 + $0x2b0] sm:$0xff] %v328_v22  ;;  %v334_v25 = vld [vmem:[%s3346_s25 + $0x4c8] sm:$0xff]  ;;  %331 = vst [vmem:[%s3351_s26 + $0x2b8] sm:$0xff] %v330_v23  ;;  %v336_v26 = vld [vmem:[%s3346_s25 + $0x4d0] sm:$0xff] }
  0x3e   : > { %333 = vst [vmem:[%s3351_s26 + $0x2c0] sm:$0xff] %v332_v24  ;;  %335 = vst [vmem:[%s3351_s26 + $0x2c8] sm:$0xff] %v334_v25  ;;  %v338_v27 = vld [vmem:[%s3346_s25 + $0x4d8] sm:$0xff]  ;;  %v340_v28 = vld [vmem:[%s3346_s25 + $0x4e0] sm:$0xff] }
  0x3f   : > { %337 = vst [vmem:[%s3351_s26 + $0x2d0] sm:$0xff] %v336_v26  ;;  %339 = vst [vmem:[%s3351_s26 + $0x2d8] sm:$0xff] %v338_v27  ;;  %v342_v29 = vld [vmem:[%s3346_s25 + $0x4e8] sm:$0xff]  ;;  %v344_v30 = vld [vmem:[%s3346_s25 + $0x4f0] sm:$0xff] }
  0x40   : > { %341 = vst [vmem:[%s3351_s26 + $0x2e0] sm:$0xff] %v340_v28  ;;  %v346_v31 = vld [vmem:[%s3346_s25 + $0x4f8] sm:$0xff]  ;;  %343 = vst [vmem:[%s3351_s26 + $0x2e8] sm:$0xff] %v342_v29  ;;  %v348_v32 = vld [vmem:[%s3346_s25 + $0x600] sm:$0xff] }
  0x41   : > { %345 = vst [vmem:[%s3351_s26 + $0x2f0] sm:$0xff] %v344_v30  ;;  %347 = vst [vmem:[%s3351_s26 + $0x2f8] sm:$0xff] %v346_v31  ;;  %v350_v33 = vld [vmem:[%s3346_s25 + $0x608] sm:$0xff]  ;;  %v352_v34 = vld [vmem:[%s3346_s25 + $0x610] sm:$0xff] }
  0x42   : > { %349 = vst [vmem:[%s3351_s26 + $0x300] sm:$0xff] %v348_v32  ;;  %351 = vst [vmem:[%s3351_s26 + $0x308] sm:$0xff] %v350_v33  ;;  %v354_v35 = vld [vmem:[%s3346_s25 + $0x618] sm:$0xff]  ;;  %v356_v36 = vld [vmem:[%s3346_s25 + $0x620] sm:$0xff] }
  0x43   : > { %353 = vst [vmem:[%s3351_s26 + $0x310] sm:$0xff] %v352_v34  ;;  %v358_v37 = vld [vmem:[%s3346_s25 + $0x628] sm:$0xff]  ;;  %355 = vst [vmem:[%s3351_s26 + $0x318] sm:$0xff] %v354_v35  ;;  %v360_v38 = vld [vmem:[%s3346_s25 + $0x630] sm:$0xff] }
  0x44   : > { %357 = vst [vmem:[%s3351_s26 + $0x320] sm:$0xff] %v356_v36  ;;  %359 = vst [vmem:[%s3351_s26 + $0x328] sm:$0xff] %v358_v37  ;;  %v362_v39 = vld [vmem:[%s3346_s25 + $0x638] sm:$0xff]  ;;  %v364_v40 = vld [vmem:[%s3346_s25 + $0x640] sm:$0xff] }
  0x45   : > { %361 = vst [vmem:[%s3351_s26 + $0x330] sm:$0xff] %v360_v38  ;;  %363 = vst [vmem:[%s3351_s26 + $0x338] sm:$0xff] %v362_v39  ;;  %v366_v41 = vld [vmem:[%s3346_s25 + $0x648] sm:$0xff]  ;;  %v368_v42 = vld [vmem:[%s3346_s25 + $0x650] sm:$0xff] }
  0x46   : > { %365 = vst [vmem:[%s3351_s26 + $0x340] sm:$0xff] %v364_v40  ;;  %v370_v43 = vld [vmem:[%s3346_s25 + $0x658] sm:$0xff]  ;;  %367 = vst [vmem:[%s3351_s26 + $0x348] sm:$0xff] %v366_v41  ;;  %v372_v44 = vld [vmem:[%s3346_s25 + $0x660] sm:$0xff] }
  0x47   : > { %369 = vst [vmem:[%s3351_s26 + $0x350] sm:$0xff] %v368_v42  ;;  %371 = vst [vmem:[%s3351_s26 + $0x358] sm:$0xff] %v370_v43  ;;  %v374_v45 = vld [vmem:[%s3346_s25 + $0x668] sm:$0xff]  ;;  %v376_v46 = vld [vmem:[%s3346_s25 + $0x670] sm:$0xff] }
  0x48   : > { %373 = vst [vmem:[%s3351_s26 + $0x360] sm:$0xff] %v372_v44  ;;  %375 = vst [vmem:[%s3351_s26 + $0x368] sm:$0xff] %v374_v45  ;;  %v378_v47 = vld [vmem:[%s3346_s25 + $0x678] sm:$0xff]  ;;  %v380_v48 = vld [vmem:[%s3346_s25 + $0x680] sm:$0xff] }
  0x49   : > { %377 = vst [vmem:[%s3351_s26 + $0x370] sm:$0xff] %v376_v46  ;;  %v382_v49 = vld [vmem:[%s3346_s25 + $0x688] sm:$0xff]  ;;  %379 = vst [vmem:[%s3351_s26 + $0x378] sm:$0xff] %v378_v47  ;;  %v384_v50 = vld [vmem:[%s3346_s25 + $0x690] sm:$0xff] }
  0x4a   : > { %381 = vst [vmem:[%s3351_s26 + $0x380] sm:$0xff] %v380_v48  ;;  %383 = vst [vmem:[%s3351_s26 + $0x388] sm:$0xff] %v382_v49  ;;  %v386_v51 = vld [vmem:[%s3346_s25 + $0x698] sm:$0xff]  ;;  %v388_v52 = vld [vmem:[%s3346_s25 + $0x6a0] sm:$0xff] }
  0x4b   : > { %385 = vst [vmem:[%s3351_s26 + $0x390] sm:$0xff] %v384_v50  ;;  %387 = vst [vmem:[%s3351_s26 + $0x398] sm:$0xff] %v386_v51  ;;  %v390_v53 = vld [vmem:[%s3346_s25 + $0x6a8] sm:$0xff]  ;;  %v392_v54 = vld [vmem:[%s3346_s25 + $0x6b0] sm:$0xff] }
  0x4c   : > { %389 = vst [vmem:[%s3351_s26 + $0x3a0] sm:$0xff] %v388_v52  ;;  %v394_v55 = vld [vmem:[%s3346_s25 + $0x6b8] sm:$0xff]  ;;  %391 = vst [vmem:[%s3351_s26 + $0x3a8] sm:$0xff] %v390_v53  ;;  %v396_v56 = vld [vmem:[%s3346_s25 + $0x6c0] sm:$0xff] }
  0x4d   : > { %393 = vst [vmem:[%s3351_s26 + $0x3b0] sm:$0xff] %v392_v54  ;;  %395 = vst [vmem:[%s3351_s26 + $0x3b8] sm:$0xff] %v394_v55  ;;  %v398_v57 = vld [vmem:[%s3346_s25 + $0x6c8] sm:$0xff]  ;;  %v400_v58 = vld [vmem:[%s3346_s25 + $0x6d0] sm:$0xff] }
  0x4e   : > { %397 = vst [vmem:[%s3351_s26 + $0x3c0] sm:$0xff] %v396_v56  ;;  %399 = vst [vmem:[%s3351_s26 + $0x3c8] sm:$0xff] %v398_v57  ;;  %v402_v59 = vld [vmem:[%s3346_s25 + $0x6d8] sm:$0xff]  ;;  %v404_v60 = vld [vmem:[%s3346_s25 + $0x6e0] sm:$0xff] }
  0x4f   : > { %401 = vst [vmem:[%s3351_s26 + $0x3d0] sm:$0xff] %v400_v58  ;;  %v406_v61 = vld [vmem:[%s3346_s25 + $0x6e8] sm:$0xff]  ;;  %403 = vst [vmem:[%s3351_s26 + $0x3d8] sm:$0xff] %v402_v59  ;;  %v408_v62 = vld [vmem:[%s3346_s25 + $0x6f0] sm:$0xff] }
  0x50   : > { %405 = vst [vmem:[%s3351_s26 + $0x3e0] sm:$0xff] %v404_v60  ;;  %407 = vst [vmem:[%s3351_s26 + $0x3e8] sm:$0xff] %v406_v61  ;;  %v410_v63 = vld [vmem:[%s3346_s25 + $0x6f8] sm:$0xff] }
  0x51   : > { %409 = vst [vmem:[%s3351_s26 + $0x3f0] sm:$0xff] %v408_v62  ;;  %411 = vst [vmem:[%s3351_s26 + $0x3f8] sm:$0xff] %v410_v63 }
  0x52 PF: > { %p3056_p5 = scmp.ge.s32.totalorder %s3286_s14, 1  ;;  %p416_p6 = scmp.lt.s32.totalorder %s3286_s14, 3 }
  0x54   : > { %p417_p7 = pnand %p3056_p5, %p416_p6 }
  0x55   : > { %s423_s27 = sand.u32 (!%p417_p7), 1, %s3278_s12   ;;  %s3058_s28 = sshll.u32 (!%p417_p7), %s3326_s15, 6 }
  0x56   : > { %420 = sbr.rel (%p417_p7) target bundleno = 593 (0x251), region = 51  ;;  %s3057_s29 = sshll.u32 (!%p417_p7), %s423_s27, 10 }
  0x57   : > { %p446_p8 = scmp.lt.s32.totalorder (!%p417_p7), %s3058_s28, 127  ;;  %s3615_s6 = scalar_lea.vmem (!%p417_p7), [#allocation2], %s3057_s29 }
  0x58   : > { %p3059_p9 = scmp.ne.s32.totalorder (!%p417_p7), %s3326_s15, 0 }
  0x5d   : > { %s3848_s28 = smov (!%p446_p8, %s3058_s28), 127  ;;  %455 = sbr.rel (%p3059_p9) target bundleno = 100 (0x64), region = 59 }
  0x5e   : > { %s3613_s5 = scalar_lea.vmem %s3840_s0, %s3848_s28  ;;  %v3060_v0 = vld [vmem:[%s3842_s2] ss:$0 sm:$0xff] (!%p3059_p9)  ;;  %vm463_vm0 = vcmask (!%p3059_p9), 254976  }
  0x5f   : > { %464 = vst.msk [vmem:[#allocation3] sm:$0x3] (!%p3059_p9), %vm463_vm0, %v3060_v0 }
  0x64 PF: > { %v474_v1 = vld [vmem:[%s3615_s6] sm:$0xff]  ;;  %v475_v3 = vld [vmem:[%s3615_s6 + $0x8] sm:$0xff]  ;;  %v614_v4 = vlaneseq  ;;  %v3288_v10 = vmov 1966171168   ;;  %v476_v23 = vld [vmem:[%s3615_s6 + $0x10] sm:$0xff]  ;;  %s3289_s9 = smov [#allocation3]  }
  0x65   : > { %v506_v2 = vld [vmem:[%s3615_s6 + $0x100] sm:$0xff]  ;;  %v507_v6 = vld [vmem:[%s3615_s6 + $0x108] sm:$0xff]  ;;  %v612_v11 = vunpack.c.l.s4 %v3288_v10  ;;  %v508_v24 = vld [vmem:[%s3615_s6 + $0x110] sm:$0xff]  ;;  %s2996_s10 = sshll.u32 %s3289_s9, 4  ;;  %vm2987_vm1 = vcmask 254976   ;;  %p3198_p10 = scmp.eq.s32.totalorder %s3326_s15, 1  ;;  %s2997_s10 = int_to_ptr.vmem [resolvable:$true] %s2996_s10 }
  0x66   : > { %v3062_v5 = vcombine.high %v474_v1, %v506_v2  ;;  %v3061_v7 = vcombine.low %v474_v1, %v506_v2  ;;  %v538_v8 = vld [vmem:[%s3615_s6 + $0x200] sm:$0xff]  ;;  %v3064_v12 = vcombine.high %v475_v3, %v507_v6  ;;  %v3063_v13 = vcombine.low %v475_v3, %v507_v6  ;;  %v539_v15 = vld [vmem:[%s3615_s6 + $0x208] sm:$0xff]  ;;  %v477_v25 = vld [vmem:[%s3615_s6 + $0x18] sm:$0xff]  ;;  %s3234_s11 = scalar_lea.vmem %s2997_s10, 32  ;;  %p3241_p0 = scmp.lt.s32.totalorder %s2997_s10, %s2997_s10 }
  0x67   : > { %v570_v9 = vld [vmem:[%s3615_s6 + $0x300] sm:$0xff]  ;;  %v571_v16 = vld [vmem:[%s3615_s6 + $0x308] sm:$0xff]  ;;  %v613_v19 = vunpack.c.0.s8 %v612_v11  ;;  %v615_v21 = vshrl.u32 %v614_v4, 7  ;;  %v509_v26 = vld [vmem:[%s3615_s6 + $0x118] sm:$0xff]  ;;  %v3066_v31 = vcombine.high %v476_v23, %v508_v24  ;;  %v3065_v44 = vcombine.low %v476_v23, %v508_v24  ;;  %p3235_p11 = scmp.ne.s32.totalorder %s2997_s10, %s3234_s11  ;;  %p3242_p1 = scmp.lt.s32.totalorder %s3234_s11, %s3234_s11 }
  0x68   : > { %v3126_v14 = vcombine.high %v538_v8, %v570_v9  ;;  %1706 = vmatprep.subr.bf16.mxu0 %v3062_v5  ;;  %v3128_v17 = vcombine.high %v539_v15, %v571_v16  ;;  %v466_v18 = vld [vmem:[%s3613_s5] sm:$0xff]  ;;  %1746 = vmatprep.subr.bf16.mxu1 %v3064_v12  ;;  %v3125_v27 = vcombine.low %v538_v8, %v570_v9  ;;  %v540_v38 = vld [vmem:[%s3615_s6 + $0x210] sm:$0xff]  ;;  %v541_v40 = vld [vmem:[%s3615_s6 + $0x218] sm:$0xff] }
  0x69   : > { %1707 = vmatpush1.bf16.xpose.msra.mxu0 %v3061_v7  ;;  %v610_v20 = vcombine.high %v466_v18, %v466_v18  ;;  %1747 = vmatpush1.bf16.xpose.msra.mxu1 %v3063_v13  ;;  %v3630_v22 = vsub.s32 %v613_v19, %v615_v21  ;;  %v3127_v30 = vcombine.low %v539_v15, %v571_v16  ;;  %v572_v39 = vld [vmem:[%s3615_s6 + $0x310] sm:$0xff]  ;;  %v573_v41 = vld [vmem:[%s3615_s6 + $0x318] sm:$0xff]  ;;  %v467_v49 = vld [vmem:[%s3613_s5 + $0x8] sm:$0xff]  ;;  %p3236_p12 = pnand %p3235_p11, %p3198_p10  ;;  %p3243_p2 = por %p3242_p1, %p3241_p0 }
  0x6a   : > { %1708 = vmatprep.subr.bf16.mxu0 %v3126_v14  ;;  %1748 = vmatprep.subr.bf16.mxu1 %v3128_v17  ;;  %v3068_v33 = vcombine.high %v477_v25, %v509_v26  ;;  %v3067_v45 = vcombine.low %v477_v25, %v509_v26  ;;  %v3130_v46 = vcombine.high %v540_v38, %v572_v39  ;;  %v478_v50 = vld [vmem:[%s3615_s6 + $0x20] sm:$0xff]  ;;  %v479_v52 = vld [vmem:[%s3615_s6 + $0x28] sm:$0xff]  ;;  %v480_v9 = vld [vmem:[%s3615_s6 + $0x30] sm:$0xff] }
  0x6b   : > { %v617_v28 = vrot.slane %v466_v18, %v3630_v22  ;;  %v624_v29 = vrot.slane %v610_v20, %v3630_v22  ;;  %v3132_v47 = vcombine.high %v541_v40, %v573_v41  ;;  %v510_v51 = vld [vmem:[%s3615_s6 + $0x120] sm:$0xff]  ;;  %v511_v53 = vld [vmem:[%s3615_s6 + $0x128] sm:$0xff]  ;;  %v666_v54 = vrot.slane %v467_v49, %v3630_v22  ;;  %v512_v10 = vld [vmem:[%s3615_s6 + $0x130] sm:$0xff]  ;;  %p3237_p13 = pneg %p3236_p12 }
  0x6c   : > { %v3129_v55 = vcombine.low %v540_v38, %v572_v39  ;;  %v3131_v56 = vcombine.low %v541_v40, %v573_v41  ;;  %v3070_v57 = vcombine.high %v478_v50, %v510_v51  ;;  %v3072_v58 = vcombine.high %v479_v52, %v511_v53  ;;  %v542_v61 = vld [vmem:[%s3615_s6 + $0x220] sm:$0xff]  ;;  %v543_v63 = vld [vmem:[%s3615_s6 + $0x228] sm:$0xff]  ;;  %v481_v11 = vld [vmem:[%s3615_s6 + $0x38] sm:$0xff] }
  0x6d   : > { %v625_v32 = vcombine.high %v617_v28, %v617_v28  ;;  %v626_v34 = vcombine.high %v624_v29, %v624_v29  ;;  %v633_v36 = vrot.slane %v617_v28, %v3630_v22  ;;  %v674_v59 = vcombine.high %v666_v54, %v666_v54  ;;  %v574_v62 = vld [vmem:[%s3615_s6 + $0x320] sm:$0xff]  ;;  %v575_v0 = vld [vmem:[%s3615_s6 + $0x328] sm:$0xff]  ;;  %v513_v12 = vld [vmem:[%s3615_s6 + $0x138] sm:$0xff]  ;;  %p3244_p3 = pnand %p3243_p2, %p3237_p13 }
  0x6e   : > { %v640_v60 = vrot.slane %v624_v29, %v3630_v22  ;;  %v3069_v3 = vcombine.low %v478_v50, %v510_v51  ;;  %v3071_v4 = vcombine.low %v479_v52, %v511_v53  ;;  %v3134_v5 = vcombine.high %v542_v61, %v574_v62  ;;  %v544_v20 = vld [vmem:[%s3615_s6 + $0x230] sm:$0xff]  ;;  %v545_v23 = vld [vmem:[%s3615_s6 + $0x238] sm:$0xff] }
  0x6f   : > { %v647_v35 = vrot.slane %v625_v32, %v3630_v22  ;;  %v654_v42 = vrot.slane %v626_v34, %v3630_v22  ;;  %v655_v43 = vcombine.high %v633_v36, %v633_v36  ;;  %v696_v1 = vrot.slane %v674_v59, %v3630_v22  ;;  %v576_v21 = vld [vmem:[%s3615_s6 + $0x330] sm:$0xff]  ;;  %v577_v24 = vld [vmem:[%s3615_s6 + $0x338] sm:$0xff]  ;;  %v514_v34 = vld [vmem:[%s3615_s6 + $0x140] sm:$0xff] }
  0x70   : > { %v656_v2 = vcombine.high %v640_v60, %v640_v60  ;;  %v3136_v6 = vcombine.high %v543_v63, %v575_v0  ;;  %v659_v8 = vcombine.high %v467_v49, %v467_v49  ;;  %v3133_v14 = vcombine.low %v542_v61, %v574_v62  ;;  %v468_v32 = vld [vmem:[%s3613_s5 + $0x10] sm:$0xff]  ;;  %v517_v59 = vld [vmem:[%s3615_s6 + $0x158] sm:$0xff] }
  0x71   : > { %1709 = vmatpush1.bf16.xpose.msra.mxu0 %v3125_v27  ;;  %1749 = vmatpush1.bf16.xpose.msra.mxu1 %v3127_v30  ;;  %v657_v37 = vcombine.high %v647_v35, %v647_v35  ;;  %v658_v48 = vcombine.high %v654_v42, %v654_v42  ;;  %v706_v7 = vcombine.high %v696_v1, %v696_v1 }
  0x72   : > { %1786 = vmatprep.subr.bf16.mxu0 %v3066_v31  ;;  %1738 = vmatprep.mubr.bf16.mxu0 %v647_v35  ;;  %v673_v13 = vrot.slane %v659_v8, %v3630_v22  ;;  %v3135_v15 = vcombine.low %v543_v63, %v575_v0  ;;  %v3074_v16 = vcombine.high %v480_v9, %v512_v10  ;;  %v483_v35 = vld [vmem:[%s3615_s6 + $0x48] sm:$0xff] }
  0x73   : > { %1826 = vmatprep.subr.bf16.mxu1 %v3068_v33  ;;  %1778 = vmatprep.mubr.bf16.mxu1 %v657_v37  ;;  %v3076_v17 = vcombine.high %v481_v11, %v513_v12  ;;  %v682_v19 = vrot.slane %v666_v54, %v3630_v22  ;;  %v3073_v27 = vcombine.low %v480_v9, %v512_v10  ;;  %v482_v33 = vld [vmem:[%s3615_s6 + $0x40] sm:$0xff] }
  0x74   : > { %v675_v18 = vcombine.high %v673_v13, %v673_v13  ;;  %v3075_v28 = vcombine.low %v481_v11, %v513_v12  ;;  %v3138_v29 = vcombine.high %v544_v20, %v576_v21  ;;  %v3140_v30 = vcombine.high %v545_v23, %v577_v24 }
  0x75   : > { %v704_v26 = vcombine.high %v682_v19, %v682_v19  ;;  %v715_v37 = vrot.slane %v468_v32, %v3630_v22  ;;  %v3137_v38 = vcombine.low %v544_v20, %v576_v21  ;;  %v3139_v39 = vcombine.low %v545_v23, %v577_v24 }
  0x76   : > { %v703_v25 = vrot.slane %v675_v18, %v3630_v22  ;;  %v3078_v40 = vcombine.high %v482_v33, %v514_v34  ;;  %v3077_v50 = vcombine.low %v482_v33, %v514_v34  ;;  %v519_v18 = vld [vmem:[%s3615_s6 + $0x168] sm:$0xff] }
  0x78   : > { %1739 = vmatmul.mubr.bf16.vlgmr.msra.gmra.mrb[0].mxu0 %v633_v36  ;;  %1779 = vmatmul.mubr.bf16.vlgmr.msra.gmra.mrb[0].mxu1 %v655_v43  ;;  %v707_v31 = vcombine.high %v703_v25, %v703_v25  ;;  %v515_v36 = vld [vmem:[%s3615_s6 + $0x148] sm:$0xff]  ;;  %v689_v43 = vrot.slane %v673_v13, %v3630_v22 }
  0x79   : > { %1787 = vmatpush1.bf16.xpose.msra.mxu0 %v3065_v44  ;;  %1827 = vmatpush1.bf16.xpose.msra.mxu1 %v3067_v45  ;;  %v3080_v41 = vcombine.high %v483_v35, %v515_v36  ;;  %v546_v44 = vld [vmem:[%s3615_s6 + $0x240] sm:$0xff]  ;;  %v3079_v51 = vcombine.low %v483_v35, %v515_v36 }
  0x7a   : > { %1788 = vmatprep.subr.bf16.mxu0 %v3130_v46  ;;  %1828 = vmatprep.subr.bf16.mxu1 %v3132_v47  ;;  %v578_v45 = vld [vmem:[%s3615_s6 + $0x340] sm:$0xff]  ;;  %v547_v46 = vld [vmem:[%s3615_s6 + $0x248] sm:$0xff]  ;;  %v705_v49 = vcombine.high %v689_v43, %v689_v43 }
  0x7b   : > { %1818 = vmatprep.mubr.bf16.mxu0 %v654_v42  ;;  %1858 = vmatprep.mubr.bf16.mxu1 %v658_v48  ;;  %v723_v42 = vcombine.high %v715_v37, %v715_v37  ;;  %v579_v47 = vld [vmem:[%s3615_s6 + $0x348] sm:$0xff]  ;;  %v3142_v52 = vcombine.high %v546_v44, %v578_v45  ;;  %v3141_v61 = vcombine.low %v546_v44, %v578_v45 }
  0x7c   : > { %v3144_v53 = vcombine.high %v547_v46, %v579_v47  ;;  %v3143_v62 = vcombine.low %v547_v46, %v579_v47 }
  0x7d   : > { %v745_v48 = vrot.slane %v723_v42, %v3630_v22  ;;  %v521_v42 = vld [vmem:[%s3615_s6 + $0x178] sm:$0xff] }
  0x7f   : > { %v755_v54 = vcombine.high %v745_v48, %v745_v48 }
  0x81   : > { %1789 = vmatpush1.bf16.xpose.msra.mxu0 %v3129_v55  ;;  %1829 = vmatpush1.bf16.xpose.msra.mxu1 %v3131_v56  ;;  %v708_v55 = vcombine.high %v468_v32, %v468_v32  ;;  %v484_v56 = vld [vmem:[%s3615_s6 + $0x50] sm:$0xff] }
  0x82   : > { %1866 = vmatprep.subr.bf16.mxu0 %v3070_v57  ;;  %1906 = vmatprep.subr.bf16.mxu1 %v3072_v58  ;;  %v516_v57 = vld [vmem:[%s3615_s6 + $0x150] sm:$0xff]  ;;  %v485_v58 = vld [vmem:[%s3615_s6 + $0x58] sm:$0xff] }
  0x83   : > { %v3082_v63 = vcombine.high %v484_v56, %v516_v57  ;;  %v3084_v0 = vcombine.high %v485_v58, %v517_v59  ;;  %v3081_v9 = vcombine.low %v484_v56, %v516_v57  ;;  %v3083_v10 = vcombine.low %v485_v58, %v517_v59 }
  0x88   : > { %1819 = vmatmul.mubr.bf16.vlgmr.msra.gmra.mrb[4].mxu0 %v640_v60  ;;  %1859 = vmatmul.mubr.bf16.vlgmr.msra.gmra.mrb[4].mxu1 %v656_v2  ;;  %v722_v60 = vrot.slane %v708_v55, %v3630_v22  ;;  %v731_v2 = vrot.slane %v715_v37, %v3630_v22 }
  0x89   : > { %1867 = vmatpush1.bf16.xpose.msra.mxu0 %v3069_v3  ;;  %1907 = vmatpush1.bf16.xpose.msra.mxu1 %v3071_v4  ;;  %v548_v3 = vld [vmem:[%s3615_s6 + $0x250] sm:$0xff] }
  0x8a   : > { %1868 = vmatprep.subr.bf16.mxu0 %v3134_v5  ;;  %1908 = vmatprep.subr.bf16.mxu1 %v3136_v6  ;;  %v580_v4 = vld [vmem:[%s3615_s6 + $0x350] sm:$0xff]  ;;  %v549_v5 = vld [vmem:[%s3615_s6 + $0x258] sm:$0xff]  ;;  %v753_v8 = vcombine.high %v731_v2, %v731_v2 }
  0x8b   : > { %1898 = vmatprep.mubr.bf16.mxu0 %v696_v1  ;;  %1938 = vmatprep.mubr.bf16.mxu1 %v706_v7  ;;  %v724_v1 = vcombine.high %v722_v60, %v722_v60  ;;  %v581_v6 = vld [vmem:[%s3615_s6 + $0x358] sm:$0xff]  ;;  %v3146_v11 = vcombine.high %v548_v3, %v580_v4  ;;  %v3145_v20 = vcombine.low %v548_v3, %v580_v4 }
  0x8c   : > { %v3148_v12 = vcombine.high %v549_v5, %v581_v6  ;;  %v3147_v21 = vcombine.low %v549_v5, %v581_v6 }
  0x8d   : > { %v752_v7 = vrot.slane %v724_v1, %v3630_v22  ;;  %v523_v1 = vld [vmem:[%s3615_s6 + $0x188] sm:$0xff] }
  0x8f   : > { %v756_v13 = vcombine.high %v752_v7, %v752_v7 }
  0x91   : > { %1869 = vmatpush1.bf16.xpose.msra.mxu0 %v3133_v14  ;;  %1909 = vmatpush1.bf16.xpose.msra.mxu1 %v3135_v15  ;;  %v469_v14 = vld [vmem:[%s3613_s5 + $0x18] sm:$0xff]  ;;  %v486_v15 = vld [vmem:[%s3615_s6 + $0x60] sm:$0xff] }
  0x92   : > { %1946 = vmatprep.subr.bf16.mxu0 %v3074_v16  ;;  %1986 = vmatprep.subr.bf16.mxu1 %v3076_v17  ;;  %v518_v16 = vld [vmem:[%s3615_s6 + $0x160] sm:$0xff]  ;;  %v487_v17 = vld [vmem:[%s3615_s6 + $0x68] sm:$0xff] }
  0x93   : > { %v3086_v23 = vcombine.high %v486_v15, %v518_v16  ;;  %v3088_v24 = vcombine.high %v487_v17, %v519_v18  ;;  %v3085_v33 = vcombine.low %v486_v15, %v518_v16  ;;  %v3087_v34 = vcombine.low %v487_v17, %v519_v18 }
  0x98   : > { %1899 = vmatmul.mubr.bf16.vlgmr.msra.gmra.mrb[8].mxu0 %v682_v19  ;;  %1939 = vmatmul.mubr.bf16.vlgmr.msra.gmra.mrb[8].mxu1 %v704_v26  ;;  %v764_v19 = vrot.slane %v469_v14, %v3630_v22  ;;  %v738_v26 = vrot.slane %v722_v60, %v3630_v22 }
  0x99   : > { %1947 = vmatpush1.bf16.xpose.msra.mxu0 %v3073_v27  ;;  %1987 = vmatpush1.bf16.xpose.msra.mxu1 %v3075_v28  ;;  %v550_v27 = vld [vmem:[%s3615_s6 + $0x260] sm:$0xff] }
  0x9a   : > { %1948 = vmatprep.subr.bf16.mxu0 %v3138_v29  ;;  %1988 = vmatprep.subr.bf16.mxu1 %v3140_v30  ;;  %v582_v28 = vld [vmem:[%s3615_s6 + $0x360] sm:$0xff]  ;;  %v551_v29 = vld [vmem:[%s3615_s6 + $0x268] sm:$0xff]  ;;  %v754_v32 = vcombine.high %v738_v26, %v738_v26 }
  0x9b   : > { %1978 = vmatprep.mubr.bf16.mxu0 %v703_v25  ;;  %2018 = vmatprep.mubr.bf16.mxu1 %v707_v31  ;;  %v772_v25 = vcombine.high %v764_v19, %v764_v19  ;;  %v583_v30 = vld [vmem:[%s3615_s6 + $0x368] sm:$0xff]  ;;  %v3150_v35 = vcombine.high %v550_v27, %v582_v28  ;;  %v3149_v44 = vcombine.low %v550_v27, %v582_v28 }
  0x9c   : > { %v3152_v36 = vcombine.high %v551_v29, %v583_v30  ;;  %v3151_v45 = vcombine.low %v551_v29, %v583_v30 }
  0x9d   : > { %v794_v31 = vrot.slane %v772_v25, %v3630_v22  ;;  %v525_v25 = vld [vmem:[%s3615_s6 + $0x198] sm:$0xff] }
  0x9f   : > { %v804_v37 = vcombine.high %v794_v31, %v794_v31 }
  0xa1   : > { %1949 = vmatpush1.bf16.xpose.msra.mxu0 %v3137_v38  ;;  %1989 = vmatpush1.bf16.xpose.msra.mxu1 %v3139_v39  ;;  %v757_v38 = vcombine.high %v469_v14, %v469_v14  ;;  %v488_v39 = vld [vmem:[%s3615_s6 + $0x70] sm:$0xff] }
  0xa2   : > { %2026 = vmatprep.subr.bf16.mxu0 %v3078_v40  ;;  %2066 = vmatprep.subr.bf16.mxu1 %v3080_v41  ;;  %v520_v40 = vld [vmem:[%s3615_s6 + $0x170] sm:$0xff]  ;;  %v489_v41 = vld [vmem:[%s3615_s6 + $0x78] sm:$0xff] }
  0xa3   : > { %v3090_v46 = vcombine.high %v488_v39, %v520_v40  ;;  %v3092_v47 = vcombine.high %v489_v41, %v521_v42  ;;  %v3089_v56 = vcombine.low %v488_v39, %v520_v40  ;;  %v3091_v57 = vcombine.low %v489_v41, %v521_v42 }
  0xa8   : > { %1979 = vmatmul.mubr.bf16.vlgmr.msra.gmra.mrb[12].mxu0 %v689_v43  ;;  %2019 = vmatmul.mubr.bf16.vlgmr.msra.gmra.mrb[12].mxu1 %v705_v49  ;;  %v771_v43 = vrot.slane %v757_v38, %v3630_v22  ;;  %v780_v49 = vrot.slane %v764_v19, %v3630_v22 }
  0xa9   : > { %2027 = vmatpush1.bf16.xpose.msra.mxu0 %v3077_v50  ;;  %2067 = vmatpush1.bf16.xpose.msra.mxu1 %v3079_v51  ;;  %v552_v50 = vld [vmem:[%s3615_s6 + $0x270] sm:$0xff] }
  0xaa   : > { %2028 = vmatprep.subr.bf16.mxu0 %v3142_v52  ;;  %2068 = vmatprep.subr.bf16.mxu1 %v3144_v53  ;;  %v584_v51 = vld [vmem:[%s3615_s6 + $0x370] sm:$0xff]  ;;  %v553_v52 = vld [vmem:[%s3615_s6 + $0x278] sm:$0xff]  ;;  %v802_v55 = vcombine.high %v780_v49, %v780_v49 }
  0xab   : > { %2058 = vmatprep.mubr.bf16.mxu0 %v745_v48  ;;  %2098 = vmatprep.mubr.bf16.mxu1 %v755_v54  ;;  %v773_v48 = vcombine.high %v771_v43, %v771_v43  ;;  %v585_v53 = vld [vmem:[%s3615_s6 + $0x378] sm:$0xff]  ;;  %v3154_v58 = vcombine.high %v552_v50, %v584_v51  ;;  %v3153_v3 = vcombine.low %v552_v50, %v584_v51 }
  0xac   : > { %v3156_v59 = vcombine.high %v553_v52, %v585_v53  ;;  %v3155_v4 = vcombine.low %v553_v52, %v585_v53 }
  0xad   : > { %v801_v54 = vrot.slane %v773_v48, %v3630_v22  ;;  %v527_v48 = vld [vmem:[%s3615_s6 + $0x1a8] sm:$0xff] }
  0xaf   : > { %v805_v60 = vcombine.high %v801_v54, %v801_v54 }
  0xb1   : > { %2029 = vmatpush1.bf16.xpose.msra.mxu0 %v3141_v61  ;;  %2069 = vmatpush1.bf16.xpose.msra.mxu1 %v3143_v62  ;;  %v470_v61 = vld [vmem:[%s3613_s5 + $0x20] sm:$0xff] }
  0xb2   : > { %2106 = vmatprep.subr.bf16.mxu0 %v3082_v63  ;;  %2146 = vmatprep.subr.bf16.mxu1 %v3084_v0  ;;  %v490_v62 = vld [vmem:[%s3615_s6 + $0x80] sm:$0xff]  ;;  %v491_v0 = vld [vmem:[%s3615_s6 + $0x88] sm:$0xff] }
  0xb3   : > { %v522_v63 = vld [vmem:[%s3615_s6 + $0x180] sm:$0xff]  ;;  %v3096_v6 = vcombine.high %v491_v0, %v523_v1  ;;  %v3095_v16 = vcombine.low %v491_v0, %v523_v1 }
  0xb4   : > { %v3094_v5 = vcombine.high %v490_v62, %v522_v63  ;;  %v3093_v15 = vcombine.low %v490_v62, %v522_v63 }
  0xb8   : > { %2059 = vmatmul.mubr.bf16.vlgmr.msra.gmra.mrb[16].mxu0 %v731_v2  ;;  %2099 = vmatmul.mubr.bf16.vlgmr.msra.gmra.mrb[16].mxu1 %v753_v8  ;;  %v813_v2 = vrot.slane %v470_v61, %v3630_v22  ;;  %v787_v8 = vrot.slane %v771_v43, %v3630_v22 }
  0xb9   : > { %2107 = vmatpush1.bf16.xpose.msra.mxu0 %v3081_v9  ;;  %2147 = vmatpush1.bf16.xpose.msra.mxu1 %v3083_v10  ;;  %v554_v9 = vld [vmem:[%s3615_s6 + $0x280] sm:$0xff] }
  0xba   : > { %2108 = vmatprep.subr.bf16.mxu0 %v3146_v11  ;;  %2148 = vmatprep.subr.bf16.mxu1 %v3148_v12  ;;  %v586_v10 = vld [vmem:[%s3615_s6 + $0x380] sm:$0xff]  ;;  %v555_v11 = vld [vmem:[%s3615_s6 + $0x288] sm:$0xff]  ;;  %v803_v14 = vcombine.high %v787_v8, %v787_v8 }
  0xbb   : > { %2138 = vmatprep.mubr.bf16.mxu0 %v752_v7  ;;  %2178 = vmatprep.mubr.bf16.mxu1 %v756_v13  ;;  %v821_v7 = vcombine.high %v813_v2, %v813_v2  ;;  %v587_v12 = vld [vmem:[%s3615_s6 + $0x388] sm:$0xff]  ;;  %v3158_v17 = vcombine.high %v554_v9, %v586_v10  ;;  %v3157_v27 = vcombine.low %v554_v9, %v586_v10 }
  0xbc   : > { %v3160_v18 = vcombine.high %v555_v11, %v587_v12  ;;  %v3159_v28 = vcombine.low %v555_v11, %v587_v12 }
  0xbd   : > { %v843_v13 = vrot.slane %v821_v7, %v3630_v22  ;;  %v529_v7 = vld [vmem:[%s3615_s6 + $0x1b8] sm:$0xff] }
  0xbf   : > { %v853_v19 = vcombine.high %v843_v13, %v843_v13 }
  0xc1   : > { %2109 = vmatpush1.bf16.xpose.msra.mxu0 %v3145_v20  ;;  %2149 = vmatpush1.bf16.xpose.msra.mxu1 %v3147_v21  ;;  %v806_v20 = vcombine.high %v470_v61, %v470_v61  ;;  %v492_v21 = vld [vmem:[%s3615_s6 + $0x90] sm:$0xff] }
  0xc2   : > { %2186 = vmatprep.subr.bf16.mxu0 %v3086_v23  ;;  %2226 = vmatprep.subr.bf16.mxu1 %v3088_v24  ;;  %v524_v23 = vld [vmem:[%s3615_s6 + $0x190] sm:$0xff]  ;;  %v493_v24 = vld [vmem:[%s3615_s6 + $0x98] sm:$0xff] }
  0xc3   : > { %v3098_v29 = vcombine.high %v492_v21, %v524_v23  ;;  %v3100_v30 = vcombine.high %v493_v24, %v525_v25  ;;  %v3097_v39 = vcombine.low %v492_v21, %v524_v23  ;;  %v3099_v40 = vcombine.low %v493_v24, %v525_v25 }
  0xc8   : > { %2139 = vmatmul.mubr.bf16.vlgmr.msra.gmra.mrb[20].mxu0 %v738_v26  ;;  %2179 = vmatmul.mubr.bf16.vlgmr.msra.gmra.mrb[20].mxu1 %v754_v32  ;;  %v820_v26 = vrot.slane %v806_v20, %v3630_v22  ;;  %v829_v32 = vrot.slane %v813_v2, %v3630_v22 }
  0xc9   : > { %2187 = vmatpush1.bf16.xpose.msra.mxu0 %v3085_v33  ;;  %2227 = vmatpush1.bf16.xpose.msra.mxu1 %v3087_v34  ;;  %v556_v33 = vld [vmem:[%s3615_s6 + $0x290] sm:$0xff] }
  0xca   : > { %2188 = vmatprep.subr.bf16.mxu0 %v3150_v35  ;;  %2228 = vmatprep.subr.bf16.mxu1 %v3152_v36  ;;  %v588_v34 = vld [vmem:[%s3615_s6 + $0x390] sm:$0xff]  ;;  %v557_v35 = vld [vmem:[%s3615_s6 + $0x298] sm:$0xff]  ;;  %v851_v38 = vcombine.high %v829_v32, %v829_v32 }
  0xcb   : > { %2218 = vmatprep.mubr.bf16.mxu0 %v794_v31  ;;  %2258 = vmatprep.mubr.bf16.mxu1 %v804_v37  ;;  %v822_v31 = vcombine.high %v820_v26, %v820_v26  ;;  %v589_v36 = vld [vmem:[%s3615_s6 + $0x398] sm:$0xff]  ;;  %v3162_v41 = vcombine.high %v556_v33, %v588_v34  ;;  %v3161_v50 = vcombine.low %v556_v33, %v588_v34 }
  0xcc   : > { %v3164_v42 = vcombine.high %v557_v35, %v589_v36  ;;  %v3163_v51 = vcombine.low %v557_v35, %v589_v36 }
  0xcd   : > { %v850_v37 = vrot.slane %v822_v31, %v3630_v22  ;;  %v531_v31 = vld [vmem:[%s3615_s6 + $0x1c8] sm:$0xff] }
  0xcf   : > { %v854_v43 = vcombine.high %v850_v37, %v850_v37 }
  0xd1   : > { %2189 = vmatpush1.bf16.xpose.msra.mxu0 %v3149_v44  ;;  %2229 = vmatpush1.bf16.xpose.msra.mxu1 %v3151_v45  ;;  %v471_v44 = vld [vmem:[%s3613_s5 + $0x28] sm:$0xff]  ;;  %v494_v45 = vld [vmem:[%s3615_s6 + $0xa0] sm:$0xff] }
  0xd2   : > { %2266 = vmatprep.subr.bf16.mxu0 %v3090_v46  ;;  %2306 = vmatprep.subr.bf16.mxu1 %v3092_v47  ;;  %v526_v46 = vld [vmem:[%s3615_s6 + $0x1a0] sm:$0xff]  ;;  %v495_v47 = vld [vmem:[%s3615_s6 + $0xa8] sm:$0xff] }
  0xd3   : > { %v3102_v52 = vcombine.high %v494_v45, %v526_v46  ;;  %v3104_v53 = vcombine.high %v495_v47, %v527_v48  ;;  %v3101_v62 = vcombine.low %v494_v45, %v526_v46  ;;  %v3103_v63 = vcombine.low %v495_v47, %v527_v48 }
  0xd8   : > { %2219 = vmatmul.mubr.bf16.vlgmr.msra.gmra.mrb[24].mxu0 %v780_v49  ;;  %2259 = vmatmul.mubr.bf16.vlgmr.msra.gmra.mrb[24].mxu1 %v802_v55  ;;  %v862_v49 = vrot.slane %v471_v44, %v3630_v22  ;;  %v836_v55 = vrot.slane %v820_v26, %v3630_v22 }
  0xd9   : > { %2267 = vmatpush1.bf16.xpose.msra.mxu0 %v3089_v56  ;;  %2307 = vmatpush1.bf16.xpose.msra.mxu1 %v3091_v57  ;;  %v558_v56 = vld [vmem:[%s3615_s6 + $0x2a0] sm:$0xff] }
  0xda   : > { %2268 = vmatprep.subr.bf16.mxu0 %v3154_v58  ;;  %2308 = vmatprep.subr.bf16.mxu1 %v3156_v59  ;;  %v590_v57 = vld [vmem:[%s3615_s6 + $0x3a0] sm:$0xff]  ;;  %v559_v58 = vld [vmem:[%s3615_s6 + $0x2a8] sm:$0xff]  ;;  %v852_v61 = vcombine.high %v836_v55, %v836_v55 }
  0xdb   : > { %2298 = vmatprep.mubr.bf16.mxu0 %v801_v54  ;;  %2338 = vmatprep.mubr.bf16.mxu1 %v805_v60  ;;  %v870_v54 = vcombine.high %v862_v49, %v862_v49  ;;  %v591_v59 = vld [vmem:[%s3615_s6 + $0x3a8] sm:$0xff]  ;;  %v3166_v0 = vcombine.high %v558_v56, %v590_v57  ;;  %v3165_v9 = vcombine.low %v558_v56, %v590_v57 }
  0xdc   : > { %v3168_v1 = vcombine.high %v559_v58, %v591_v59  ;;  %v3167_v10 = vcombine.low %v559_v58, %v591_v59 }
  0xdd   : > { %v892_v60 = vrot.slane %v870_v54, %v3630_v22  ;;  %v533_v54 = vld [vmem:[%s3615_s6 + $0x1d8] sm:$0xff] }
  0xdf   : > { %v902_v2 = vcombine.high %v892_v60, %v892_v60 }
  0xe1   : > { %2269 = vmatpush1.bf16.xpose.msra.mxu0 %v3153_v3  ;;  %2309 = vmatpush1.bf16.xpose.msra.mxu1 %v3155_v4  ;;  %v855_v3 = vcombine.high %v471_v44, %v471_v44  ;;  %v496_v4 = vld [vmem:[%s3615_s6 + $0xb0] sm:$0xff] }
  0xe2   : > { %2346 = vmatprep.subr.bf16.mxu0 %v3094_v5  ;;  %2386 = vmatprep.subr.bf16.mxu1 %v3096_v6  ;;  %v528_v5 = vld [vmem:[%s3615_s6 + $0x1b0] sm:$0xff]  ;;  %v497_v6 = vld [vmem:[%s3615_s6 + $0xb8] sm:$0xff] }
  0xe3   : > { %v3106_v11 = vcombine.high %v496_v4, %v528_v5  ;;  %v3108_v12 = vcombine.high %v497_v6, %v529_v7  ;;  %v3105_v21 = vcombine.low %v496_v4, %v528_v5  ;;  %v3107_v23 = vcombine.low %v497_v6, %v529_v7 }
  0xe8   : > { %2299 = vmatmul.mubr.bf16.vlgmr.msra.gmra.mrb[28].mxu0 %v787_v8  ;;  %2339 = vmatmul.mubr.bf16.vlgmr.msra.gmra.mrb[28].mxu1 %v803_v14  ;;  %v869_v8 = vrot.slane %v855_v3, %v3630_v22  ;;  %v878_v14 = vrot.slane %v862_v49, %v3630_v22 }
  0xe9   : > { %2347 = vmatpush1.bf16.xpose.msra.mxu0 %v3093_v15  ;;  %2387 = vmatpush1.bf16.xpose.msra.mxu1 %v3095_v16  ;;  %v560_v15 = vld [vmem:[%s3615_s6 + $0x2b0] sm:$0xff] }
  0xea   : > { %2348 = vmatprep.subr.bf16.mxu0 %v3158_v17  ;;  %2388 = vmatprep.subr.bf16.mxu1 %v3160_v18  ;;  %v592_v16 = vld [vmem:[%s3615_s6 + $0x3b0] sm:$0xff]  ;;  %v561_v17 = vld [vmem:[%s3615_s6 + $0x2b8] sm:$0xff]  ;;  %v900_v20 = vcombine.high %v878_v14, %v878_v14 }
  0xeb   : > { %2378 = vmatprep.mubr.bf16.mxu0 %v843_v13  ;;  %2418 = vmatprep.mubr.bf16.mxu1 %v853_v19  ;;  %v871_v13 = vcombine.high %v869_v8, %v869_v8  ;;  %v593_v18 = vld [vmem:[%s3615_s6 + $0x3b8] sm:$0xff]  ;;  %v3170_v24 = vcombine.high %v560_v15, %v592_v16  ;;  %v3169_v33 = vcombine.low %v560_v15, %v592_v16 }
  0xec   : > { %v3172_v25 = vcombine.high %v561_v17, %v593_v18  ;;  %v3171_v34 = vcombine.low %v561_v17, %v593_v18 }
  0xed   : > { %v899_v19 = vrot.slane %v871_v13, %v3630_v22  ;;  %v535_v13 = vld [vmem:[%s3615_s6 + $0x1e8] sm:$0xff] }
  0xef   : > { %v903_v26 = vcombine.high %v899_v19, %v899_v19 }
  0xf1   : > { %2349 = vmatpush1.bf16.xpose.msra.mxu0 %v3157_v27  ;;  %2389 = vmatpush1.bf16.xpose.msra.mxu1 %v3159_v28  ;;  %v472_v27 = vld [vmem:[%s3613_s5 + $0x30] sm:$0xff]  ;;  %v498_v28 = vld [vmem:[%s3615_s6 + $0xc0] sm:$0xff] }
  0xf2   : > { %2426 = vmatprep.subr.bf16.mxu0 %v3098_v29  ;;  %2466 = vmatprep.subr.bf16.mxu1 %v3100_v30  ;;  %v530_v29 = vld [vmem:[%s3615_s6 + $0x1c0] sm:$0xff]  ;;  %v499_v30 = vld [vmem:[%s3615_s6 + $0xc8] sm:$0xff] }
  0xf3   : > { %v3110_v35 = vcombine.high %v498_v28, %v530_v29  ;;  %v3112_v36 = vcombine.high %v499_v30, %v531_v31  ;;  %v3109_v45 = vcombine.low %v498_v28, %v530_v29  ;;  %v3111_v46 = vcombine.low %v499_v30, %v531_v31 }
  0xf8   : > { %2379 = vmatmul.mubr.bf16.vlgmr.msra.gmra.mrb[32].mxu0 %v829_v32  ;;  %2419 = vmatmul.mubr.bf16.vlgmr.msra.gmra.mrb[32].mxu1 %v851_v38  ;;  %v911_v32 = vrot.slane %v472_v27, %v3630_v22  ;;  %v885_v38 = vrot.slane %v869_v8, %v3630_v22 }
  0xf9   : > { %2427 = vmatpush1.bf16.xpose.msra.mxu0 %v3097_v39  ;;  %2467 = vmatpush1.bf16.xpose.msra.mxu1 %v3099_v40  ;;  %v562_v39 = vld [vmem:[%s3615_s6 + $0x2c0] sm:$0xff] }
  0xfa   : > { %2428 = vmatprep.subr.bf16.mxu0 %v3162_v41  ;;  %2468 = vmatprep.subr.bf16.mxu1 %v3164_v42  ;;  %v594_v40 = vld [vmem:[%s3615_s6 + $0x3c0] sm:$0xff]  ;;  %v563_v41 = vld [vmem:[%s3615_s6 + $0x2c8] sm:$0xff]  ;;  %v901_v44 = vcombine.high %v885_v38, %v885_v38 }
  0xfb   : > { %2458 = vmatprep.mubr.bf16.mxu0 %v850_v37  ;;  %2498 = vmatprep.mubr.bf16.mxu1 %v854_v43  ;;  %v919_v37 = vcombine.high %v911_v32, %v911_v32  ;;  %v595_v42 = vld [vmem:[%s3615_s6 + $0x3c8] sm:$0xff]  ;;  %v3174_v47 = vcombine.high %v562_v39, %v594_v40  ;;  %v3173_v56 = vcombine.low %v562_v39, %v594_v40  ;;  %v505_v39 = vld [vmem:[%s3615_s6 + $0xf8] sm:$0xff] }
  0xfc   : > { %v3176_v48 = vcombine.high %v563_v41, %v595_v42  ;;  %v3175_v57 = vcombine.low %v563_v41, %v595_v42  ;;  %v537_v40 = vld [vmem:[%s3615_s6 + $0x1f8] sm:$0xff] }
  0xfd   : > { %v941_v43 = vrot.slane %v919_v37, %v3630_v22 }
  0xff   : > { %v951_v49 = vcombine.high %v941_v43, %v941_v43 }
 0x101   : > { %2429 = vmatpush1.bf16.xpose.msra.mxu0 %v3161_v50  ;;  %2469 = vmatpush1.bf16.xpose.msra.mxu1 %v3163_v51  ;;  %v904_v50 = vcombine.high %v472_v27, %v472_v27  ;;  %v500_v51 = vld [vmem:[%s3615_s6 + $0xd0] sm:$0xff] }
 0x102   : > { %2506 = vmatprep.subr.bf16.mxu0 %v3102_v52  ;;  %2546 = vmatprep.subr.bf16.mxu1 %v3104_v53  ;;  %v532_v52 = vld [vmem:[%s3615_s6 + $0x1d0] sm:$0xff]  ;;  %v501_v53 = vld [vmem:[%s3615_s6 + $0xd8] sm:$0xff] }
 0x103   : > { %v3114_v58 = vcombine.high %v500_v51, %v532_v52  ;;  %v3116_v59 = vcombine.high %v501_v53, %v533_v54  ;;  %v3113_v4 = vcombine.low %v500_v51, %v532_v52  ;;  %v3115_v5 = vcombine.low %v501_v53, %v533_v54  ;;  %v568_v54 = vld [vmem:[%s3615_s6 + $0x2f0] sm:$0xff] }
 0x104   : > { %v3124_v51 = vcombine.high %v505_v39, %v537_v40 }
 0x108   : > { %2459 = vmatmul.mubr.bf16.vlgmr.msra.gmra.mrb[36].mxu0 %v836_v55  ;;  %2499 = vmatmul.mubr.bf16.vlgmr.msra.gmra.mrb[36].mxu1 %v852_v61  ;;  %v918_v55 = vrot.slane %v904_v50, %v3630_v22  ;;  %v927_v61 = vrot.slane %v911_v32, %v3630_v22 }
 0x109   : > { %2507 = vmatpush1.bf16.xpose.msra.mxu0 %v3101_v62  ;;  %2547 = vmatpush1.bf16.xpose.msra.mxu1 %v3103_v63  ;;  %v564_v62 = vld [vmem:[%s3615_s6 + $0x2d0] sm:$0xff] }
 0x10a   : > { %2508 = vmatprep.subr.bf16.mxu0 %v3166_v0  ;;  %2548 = vmatprep.subr.bf16.mxu1 %v3168_v1  ;;  %v596_v63 = vld [vmem:[%s3615_s6 + $0x3d0] sm:$0xff]  ;;  %v565_v0 = vld [vmem:[%s3615_s6 + $0x2d8] sm:$0xff]  ;;  %v949_v3 = vcombine.high %v927_v61, %v927_v61 }
 0x10b   : > { %2538 = vmatprep.mubr.bf16.mxu0 %v892_v60  ;;  %2578 = vmatprep.mubr.bf16.mxu1 %v902_v2  ;;  %v920_v60 = vcombine.high %v918_v55, %v918_v55  ;;  %v597_v1 = vld [vmem:[%s3615_s6 + $0x3d8] sm:$0xff]  ;;  %v3178_v6 = vcombine.high %v564_v62, %v596_v63  ;;  %v3177_v15 = vcombine.low %v564_v62, %v596_v63 }
 0x10c   : > { %v3180_v7 = vcombine.high %v565_v0, %v597_v1  ;;  %v3179_v16 = vcombine.low %v565_v0, %v597_v1 }
 0x10d   : > { %v948_v2 = vrot.slane %v920_v60, %v3630_v22 }
 0x10f   : > { %v952_v8 = vcombine.high %v948_v2, %v948_v2 }
 0x111   : > { %2509 = vmatpush1.bf16.xpose.msra.mxu0 %v3165_v9  ;;  %2549 = vmatpush1.bf16.xpose.msra.mxu1 %v3167_v10  ;;  %v473_v9 = vld [vmem:[%s3613_s5 + $0x38] sm:$0xff]  ;;  %v502_v10 = vld [vmem:[%s3615_s6 + $0xe0] sm:$0xff] }
 0x112   : > { %2586 = vmatprep.subr.bf16.mxu0 %v3106_v11  ;;  %2626 = vmatprep.subr.bf16.mxu1 %v3108_v12  ;;  %v534_v11 = vld [vmem:[%s3615_s6 + $0x1e0] sm:$0xff]  ;;  %v503_v12 = vld [vmem:[%s3615_s6 + $0xe8] sm:$0xff] }
 0x113   : > { %v3118_v17 = vcombine.high %v502_v10, %v534_v11  ;;  %v3120_v18 = vcombine.high %v503_v12, %v535_v13  ;;  %v3117_v28 = vcombine.low %v502_v10, %v534_v11  ;;  %v3119_v29 = vcombine.low %v503_v12, %v535_v13 }
 0x118   : > { %2539 = vmatmul.mubr.bf16.vlgmr.msra.gmra.mrb[40].mxu0 %v878_v14  ;;  %2579 = vmatmul.mubr.bf16.vlgmr.msra.gmra.mrb[40].mxu1 %v900_v20  ;;  %v960_v14 = vrot.slane %v473_v9, %v3630_v22  ;;  %v934_v20 = vrot.slane %v918_v55, %v3630_v22  ;;  %v600_v55 = vld [vmem:[%s3615_s6 + $0x3f0] sm:$0xff] }
 0x119   : > { %2587 = vmatpush1.bf16.xpose.msra.mxu0 %v3105_v21  ;;  %2627 = vmatpush1.bf16.xpose.msra.mxu1 %v3107_v23  ;;  %v566_v21 = vld [vmem:[%s3615_s6 + $0x2e0] sm:$0xff]  ;;  %v3186_v62 = vcombine.high %v568_v54, %v600_v55 }
 0x11a   : > { %2588 = vmatprep.subr.bf16.mxu0 %v3170_v24  ;;  %2628 = vmatprep.subr.bf16.mxu1 %v3172_v25  ;;  %v598_v23 = vld [vmem:[%s3615_s6 + $0x3e0] sm:$0xff]  ;;  %v567_v24 = vld [vmem:[%s3615_s6 + $0x2e8] sm:$0xff]  ;;  %v950_v27 = vcombine.high %v934_v20, %v934_v20  ;;  %v976_v53 = vrot.slane %v960_v14, %v3630_v22 }
 0x11b   : > { %2618 = vmatprep.mubr.bf16.mxu0 %v899_v19  ;;  %2658 = vmatprep.mubr.bf16.mxu1 %v903_v26  ;;  %v968_v19 = vcombine.high %v960_v14, %v960_v14  ;;  %v599_v25 = vld [vmem:[%s3615_s6 + $0x3e8] sm:$0xff]  ;;  %v3182_v30 = vcombine.high %v566_v21, %v598_v23 }
 0x11c   : > { %v3184_v31 = vcombine.high %v567_v24, %v599_v25 }
 0x11d   : > { %v990_v26 = vrot.slane %v968_v19, %v3630_v22 }
 0x11f   : > { %v1000_v32 = vcombine.high %v990_v26, %v990_v26 }
 0x121   : > { %2589 = vmatpush1.bf16.xpose.msra.mxu0 %v3169_v33  ;;  %2629 = vmatpush1.bf16.xpose.msra.mxu1 %v3171_v34  ;;  %v953_v33 = vcombine.high %v473_v9, %v473_v9 }
 0x122   : > { %2666 = vmatprep.subr.bf16.mxu0 %v3110_v35  ;;  %2706 = vmatprep.subr.bf16.mxu1 %v3112_v36  ;;  %v504_v35 = vld [vmem:[%s3615_s6 + $0xf0] sm:$0xff] }
 0x123   : > { %v536_v36 = vld [vmem:[%s3615_s6 + $0x1f0] sm:$0xff]  ;;  %v967_v41 = vrot.slane %v953_v33, %v3630_v22 }
 0x124   : > { %v3121_v60 = vcombine.low %v504_v35, %v536_v36 }
 0x125   : > { %v969_v52 = vcombine.high %v967_v41, %v967_v41  ;;  %v983_v13 = vrot.slane %v967_v41, %v3630_v22 }
 0x127   : > { %v999_v14 = vcombine.high %v983_v13, %v983_v13 }
 0x128   : > { %2619 = vmatmul.mubr.bf16.vlgmr.msra.gmra.mrb[44].mxu0 %v885_v38  ;;  %2659 = vmatmul.mubr.bf16.vlgmr.msra.gmra.mrb[44].mxu1 %v901_v44 }
 0x129   : > { %2667 = vmatpush1.bf16.xpose.msra.mxu0 %v3109_v45  ;;  %2707 = vmatpush1.bf16.xpose.msra.mxu1 %v3111_v46  ;;  %v3181_v45 = vcombine.low %v566_v21, %v598_v23 }
 0x12a   : > { %2668 = vmatprep.subr.bf16.mxu0 %v3174_v47  ;;  %2708 = vmatprep.subr.bf16.mxu1 %v3176_v48  ;;  %v3183_v48 = vcombine.low %v567_v24, %v599_v25 }
 0x12b   : > { %2698 = vmatprep.mubr.bf16.mxu0 %v941_v43  ;;  %2738 = vmatprep.mubr.bf16.mxu1 %v951_v49  ;;  %v3122_v49 = vcombine.high %v504_v35, %v536_v36 }
 0x131   : > { %2669 = vmatpush1.bf16.xpose.msra.mxu0 %v3173_v56  ;;  %2709 = vmatpush1.bf16.xpose.msra.mxu1 %v3175_v57  ;;  %v569_v56 = vld [vmem:[%s3615_s6 + $0x2f8] sm:$0xff] }
 0x132   : > { %2746 = vmatprep.subr.bf16.mxu0 %v3114_v58  ;;  %2786 = vmatprep.subr.bf16.mxu1 %v3116_v59  ;;  %v601_v57 = vld [vmem:[%s3615_s6 + $0x3f8] sm:$0xff]  ;;  %v997_v58 = vrot.slane %v969_v52, %v3630_v22  ;;  %v998_v59 = vcombine.high %v976_v53, %v976_v53 }
 0x133   : > { %v3188_v63 = vcombine.high %v569_v56, %v601_v57  ;;  %v3187_v11 = vcombine.low %v569_v56, %v601_v57 }
 0x134   : > { %v1001_v0 = vcombine.high %v997_v58, %v997_v58 }
 0x138   : > { %2699 = vmatmul.mubr.bf16.vlgmr.msra.gmra.mrb[48].mxu0 %v927_v61  ;;  %2739 = vmatmul.mubr.bf16.vlgmr.msra.gmra.mrb[48].mxu1 %v949_v3  ;;  %v3123_v61 = vcombine.low %v505_v39, %v537_v40 }
 0x139   : > { %2747 = vmatpush1.bf16.xpose.msra.mxu0 %v3113_v4  ;;  %2787 = vmatpush1.bf16.xpose.msra.mxu1 %v3115_v5 }
 0x13a   : > { %2748 = vmatprep.subr.bf16.mxu0 %v3178_v6  ;;  %2788 = vmatprep.subr.bf16.mxu1 %v3180_v7  ;;  %v3185_v7 = vcombine.low %v568_v54, %v600_v55 }
 0x13b   : > { %2778 = vmatprep.mubr.bf16.mxu0 %v948_v2  ;;  %2818 = vmatprep.mubr.bf16.mxu1 %v952_v8 }
 0x141   : > { %2749 = vmatpush1.bf16.xpose.msra.mxu0 %v3177_v15  ;;  %2789 = vmatpush1.bf16.xpose.msra.mxu1 %v3179_v16 }
 0x142   : > { %2826 = vmatprep.subr.bf16.mxu0 %v3118_v17  ;;  %2866 = vmatprep.subr.bf16.mxu1 %v3120_v18 }
 0x148   : > { %2779 = vmatmul.mubr.bf16.vlgmr.msra.gmra.mrb[52].mxu0 %v934_v20  ;;  %2819 = vmatmul.mubr.bf16.vlgmr.msra.gmra.mrb[52].mxu1 %v950_v27 }
 0x149   : > { %2827 = vmatpush1.bf16.xpose.msra.mxu0 %v3117_v28  ;;  %2867 = vmatpush1.bf16.xpose.msra.mxu1 %v3119_v29 }
 0x14a   : > { %2828 = vmatprep.subr.bf16.mxu0 %v3182_v30  ;;  %2868 = vmatprep.subr.bf16.mxu1 %v3184_v31 }
 0x14b   : > { %v1740_v34 = vpop.f32.mrb[0].mxu0  ;;  %2858 = vmatprep.mubr.bf16.mxu0 %v990_v26  ;;  %v1780_v37 = vpop.f32.mrb[0].mxu1  ;;  %2898 = vmatprep.mubr.bf16.mxu1 %v1000_v32 }
 0x14c   : > { %v1742_v38 = vpop.f32.mrb[1].mxu0  ;;  %v1781_v42 = vadd.f32 %v1780_v37, %v1740_v34  ;;  %v1782_v43 = vpop.f32.mrb[1].mxu1 }
 0x14d   : > { %v1743_v44 = vpop.f32.mrb[2].mxu0  ;;  %v1783_v46 = vpop.f32.mrb[2].mxu1 }
 0x14e   : > { %v1744_v47 = vpop.f32.mrb[3].mxu0  ;;  %v1784_v50 = vpop.f32.mrb[3].mxu1 }
 0x151   : > { %2829 = vmatpush1.bf16.xpose.msra.mxu0 %v3181_v45  ;;  %2869 = vmatpush1.bf16.xpose.msra.mxu1 %v3183_v48 }
 0x152   : > { %2906 = vmatprep.subr.bf16.mxu0 %v3122_v49  ;;  %2946 = vmatprep.subr.bf16.mxu1 %v3124_v51 }
 0x158   : > { %2859 = vmatmul.mubr.bf16.vlgmr.msra.gmra.mrb[56].mxu0 %v976_v53  ;;  %2899 = vmatmul.mubr.bf16.vlgmr.msra.gmra.mrb[56].mxu1 %v998_v59 }
 0x159   : > { %2907 = vmatpush1.bf16.xpose.msra.mxu0 %v3121_v60  ;;  %2947 = vmatpush1.bf16.xpose.msra.mxu1 %v3123_v61 }
 0x15a   : > { %2908 = vmatprep.subr.bf16.mxu0 %v3186_v62  ;;  %2948 = vmatprep.subr.bf16.mxu1 %v3188_v63 }
 0x15b   : > { %v1820_v1 = vpop.f32.mrb[4].mxu0  ;;  %2938 = vmatprep.mubr.bf16.mxu0 %v997_v58  ;;  %v1860_v3 = vpop.f32.mrb[4].mxu1  ;;  %2978 = vmatprep.mubr.bf16.mxu1 %v1001_v0 }
 0x15c   : > { %v1821_v2 = vadd.f32 %v1820_v1, %v1781_v42  ;;  %v1822_v4 = vpop.f32.mrb[5].mxu0  ;;  %v1862_v5 = vpop.f32.mrb[5].mxu1 }
 0x15d   : > { %v1823_v6 = vpop.f32.mrb[6].mxu0  ;;  %v1863_v9 = vpop.f32.mrb[6].mxu1 }
 0x15e   : > { %v1861_v8 = vadd.f32 %v1860_v3, %v1821_v2  ;;  %v1824_v10 = vpop.f32.mrb[7].mxu0  ;;  %v1864_v12 = vpop.f32.mrb[7].mxu1 }
 0x161   : > { %2909 = vmatpush1.bf16.xpose.msra.mxu0 %v3185_v7  ;;  %2949 = vmatpush1.bf16.xpose.msra.mxu1 %v3187_v11 }
 0x168   : > { %2939 = vmatmul.mubr.bf16.vlgmr.msra.gmra.mrb[60].mxu0 %v983_v13  ;;  %2979 = vmatmul.mubr.bf16.vlgmr.msra.gmra.mrb[60].mxu1 %v999_v14 }
 0x16b   : > { %v1900_v15 = vpop.f32.mrb[8].mxu0  ;;  %v1940_v17 = vpop.f32.mrb[8].mxu1 }
 0x16c   : > { %v1901_v16 = vadd.f32 %v1900_v15, %v1861_v8  ;;  %v1902_v18 = vpop.f32.mrb[9].mxu0  ;;  %v1942_v19 = vpop.f32.mrb[9].mxu1 }
 0x16d   : > { %v1903_v20 = vpop.f32.mrb[10].mxu0  ;;  %v1943_v23 = vpop.f32.mrb[10].mxu1 }
 0x16e   : > { %v1941_v21 = vadd.f32 %v1940_v17, %v1901_v16  ;;  %v1904_v24 = vpop.f32.mrb[11].mxu0  ;;  %v1944_v25 = vpop.f32.mrb[11].mxu1 }
 0x17b   : > { %v1980_v26 = vpop.f32.mrb[12].mxu0  ;;  %v2020_v28 = vpop.f32.mrb[12].mxu1 }
 0x17c   : > { %v1981_v27 = vadd.f32 %v1980_v26, %v1941_v21  ;;  %v1982_v29 = vpop.f32.mrb[13].mxu0  ;;  %v2022_v30 = vpop.f32.mrb[13].mxu1 }
 0x17d   : > { %v1983_v22 = vpop.f32.mrb[14].mxu0  ;;  %v2023_v32 = vpop.f32.mrb[14].mxu1 }
 0x17e   : > { %v2021_v31 = vadd.f32 %v2020_v28, %v1981_v27  ;;  %v1984_v33 = vpop.f32.mrb[15].mxu0  ;;  %v2024_v34 = vpop.f32.mrb[15].mxu1 }
 0x18b   : > { %v2060_v35 = vpop.f32.mrb[16].mxu0  ;;  %v2100_v37 = vpop.f32.mrb[16].mxu1 }
 0x18c   : > { %v2061_v36 = vadd.f32 %v2060_v35, %v2021_v31  ;;  %v2062_v38 = vpop.f32.mrb[17].mxu0  ;;  %v2102_v39 = vpop.f32.mrb[17].mxu1 }
 0x18d   : > { %v2063_v40 = vpop.f32.mrb[18].mxu0  ;;  %v2103_v42 = vpop.f32.mrb[18].mxu1 }
 0x18e   : > { %v2101_v41 = vadd.f32 %v2100_v37, %v2061_v36  ;;  %v2064_v43 = vpop.f32.mrb[19].mxu0  ;;  %v2104_v44 = vpop.f32.mrb[19].mxu1 }
 0x19b   : > { %v2140_v45 = vpop.f32.mrb[20].mxu0  ;;  %v2180_v47 = vpop.f32.mrb[20].mxu1 }
 0x19c   : > { %v2141_v46 = vadd.f32 %v2140_v45, %v2101_v41  ;;  %v2142_v48 = vpop.f32.mrb[21].mxu0  ;;  %v2182_v49 = vpop.f32.mrb[21].mxu1 }
 0x19d   : > { %v2143_v50 = vpop.f32.mrb[22].mxu0  ;;  %v2183_v52 = vpop.f32.mrb[22].mxu1 }
 0x19e   : > { %v2181_v51 = vadd.f32 %v2180_v47, %v2141_v46  ;;  %v2144_v53 = vpop.f32.mrb[23].mxu0  ;;  %v2184_v54 = vpop.f32.mrb[23].mxu1 }
 0x1ab   : > { %v2220_v55 = vpop.f32.mrb[24].mxu0  ;;  %v2260_v57 = vpop.f32.mrb[24].mxu1 }
 0x1ac   : > { %v2221_v56 = vadd.f32 %v2220_v55, %v2181_v51  ;;  %v2222_v58 = vpop.f32.mrb[25].mxu0  ;;  %v2262_v59 = vpop.f32.mrb[25].mxu1 }
 0x1ad   : > { %v2223_v60 = vpop.f32.mrb[26].mxu0  ;;  %v2263_v62 = vpop.f32.mrb[26].mxu1 }
 0x1ae   : > { %v2261_v61 = vadd.f32 %v2260_v57, %v2221_v56  ;;  %v2224_v63 = vpop.f32.mrb[27].mxu0  ;;  %v2264_v0 = vpop.f32.mrb[27].mxu1 }
 0x1bb   : > { %v2300_v1 = vpop.f32.mrb[28].mxu0  ;;  %v2340_v3 = vpop.f32.mrb[28].mxu1 }
 0x1bc   : > { %v2301_v2 = vadd.f32 %v2300_v1, %v2261_v61  ;;  %v2302_v4 = vpop.f32.mrb[29].mxu0  ;;  %v2342_v5 = vpop.f32.mrb[29].mxu1 }
 0x1bd   : > { %v2303_v6 = vpop.f32.mrb[30].mxu0  ;;  %v2343_v8 = vpop.f32.mrb[30].mxu1 }
 0x1be   : > { %v2341_v7 = vadd.f32 %v2340_v3, %v2301_v2  ;;  %v2304_v9 = vpop.f32.mrb[31].mxu0  ;;  %v2344_v10 = vpop.f32.mrb[31].mxu1 }
 0x1cb   : > { %v2380_v11 = vpop.f32.mrb[32].mxu0  ;;  %v2420_v13 = vpop.f32.mrb[32].mxu1 }
 0x1cc   : > { %v2381_v12 = vadd.f32 %v2380_v11, %v2341_v7  ;;  %v2382_v14 = vpop.f32.mrb[33].mxu0  ;;  %v2422_v15 = vpop.f32.mrb[33].mxu1 }
 0x1cd   : > { %v2383_v16 = vpop.f32.mrb[34].mxu0  ;;  %v2423_v18 = vpop.f32.mrb[34].mxu1 }
 0x1ce   : > { %v2421_v17 = vadd.f32 %v2420_v13, %v2381_v12  ;;  %v2384_v19 = vpop.f32.mrb[35].mxu0  ;;  %v2424_v20 = vpop.f32.mrb[35].mxu1 }
 0x1db   : > { %v2460_v21 = vpop.f32.mrb[36].mxu0  ;;  %v2500_v24 = vpop.f32.mrb[36].mxu1 }
 0x1dc   : > { %v2461_v23 = vadd.f32 %v2460_v21, %v2421_v17  ;;  %v2462_v25 = vpop.f32.mrb[37].mxu0  ;;  %v2502_v26 = vpop.f32.mrb[37].mxu1  ;;  %v465_v21 = vld [vmem:[#allocation3] sm:$0x3] }
 0x1dd   : > { %v2463_v27 = vpop.f32.mrb[38].mxu0  ;;  %v2503_v29 = vpop.f32.mrb[38].mxu1 }
 0x1de   : > { %v2501_v28 = vadd.f32 %v2500_v24, %v2461_v23  ;;  %v2464_v30 = vpop.f32.mrb[39].mxu0  ;;  %v2504_v22 = vpop.f32.mrb[39].mxu1 }
 0x1eb   : > { %v2540_v31 = vpop.f32.mrb[40].mxu0  ;;  %v2580_v33 = vpop.f32.mrb[40].mxu1 }
 0x1ec   : > { %v2541_v32 = vadd.f32 %v2540_v31, %v2501_v28  ;;  %v2542_v34 = vpop.f32.mrb[41].mxu0  ;;  %v2582_v35 = vpop.f32.mrb[41].mxu1 }
 0x1ed   : > { %v2543_v36 = vpop.f32.mrb[42].mxu0  ;;  %v2583_v38 = vpop.f32.mrb[42].mxu1 }
 0x1ee   : > { %v2581_v37 = vadd.f32 %v2580_v33, %v2541_v32  ;;  %v2544_v39 = vpop.f32.mrb[43].mxu0  ;;  %v2584_v40 = vpop.f32.mrb[43].mxu1 }
 0x1fb   : > { %v2620_v41 = vpop.f32.mrb[44].mxu0  ;;  %v2660_v43 = vpop.f32.mrb[44].mxu1 }
 0x1fc   : > { %v2621_v42 = vadd.f32 %v2620_v41, %v2581_v37  ;;  %v2622_v44 = vpop.f32.mrb[45].mxu0  ;;  %v2662_v45 = vpop.f32.mrb[45].mxu1 }
 0x1fd   : > { %v2623_v46 = vpop.f32.mrb[46].mxu0  ;;  %v2663_v48 = vpop.f32.mrb[46].mxu1 }
 0x1fe   : > { %v2661_v47 = vadd.f32 %v2660_v43, %v2621_v42  ;;  %v2624_v49 = vpop.f32.mrb[47].mxu0  ;;  %v2664_v50 = vpop.f32.mrb[47].mxu1 }
 0x20b   : > { %v2700_v51 = vpop.f32.mrb[48].mxu0  ;;  %v2740_v53 = vpop.f32.mrb[48].mxu1 }
 0x20c   : > { %v2701_v52 = vadd.f32 %v2700_v51, %v2661_v47  ;;  %v2702_v54 = vpop.f32.mrb[49].mxu0  ;;  %v2742_v55 = vpop.f32.mrb[49].mxu1 }
 0x20d   : > { %v2703_v56 = vpop.f32.mrb[50].mxu0  ;;  %v2743_v58 = vpop.f32.mrb[50].mxu1 }
 0x20e   : > { %v2741_v57 = vadd.f32 %v2740_v53, %v2701_v52  ;;  %v2704_v59 = vpop.f32.mrb[51].mxu0  ;;  %v2744_v60 = vpop.f32.mrb[51].mxu1 }
 0x21b   : > { %v2780_v61 = vpop.f32.mrb[52].mxu0  ;;  %v2820_v63 = vpop.f32.mrb[52].mxu1 }
 0x21c   : > { %v2781_v62 = vadd.f32 %v2780_v61, %v2741_v57  ;;  %v2782_v0 = vpop.f32.mrb[53].mxu0  ;;  %v2822_v1 = vpop.f32.mrb[53].mxu1 }
 0x21d   : > { %v2783_v2 = vpop.f32.mrb[54].mxu0  ;;  %v2823_v4 = vpop.f32.mrb[54].mxu1 }
 0x21e   : > { %v2821_v3 = vadd.f32 %v2820_v63, %v2781_v62  ;;  %v2784_v5 = vpop.f32.mrb[55].mxu0  ;;  %v2824_v6 = vpop.f32.mrb[55].mxu1 }
 0x22b   : > { %v2860_v7 = vpop.f32.mrb[56].mxu0  ;;  %v2900_v9 = vpop.f32.mrb[56].mxu1 }
 0x22c   : > { %v2861_v8 = vadd.f32 %v2860_v7, %v2821_v3  ;;  %v2862_v10 = vpop.f32.mrb[57].mxu0  ;;  %v2902_v11 = vpop.f32.mrb[57].mxu1 }
 0x22d   : > { %v2863_v12 = vpop.f32.mrb[58].mxu0  ;;  %v2903_v14 = vpop.f32.mrb[58].mxu1 }
 0x22e   : > { %v2901_v13 = vadd.f32 %v2900_v9, %v2861_v8  ;;  %v2864_v15 = vpop.f32.mrb[59].mxu0  ;;  %v2904_v16 = vpop.f32.mrb[59].mxu1 }
 0x23b   : > { %v2940_v17 = vpop.f32.mrb[60].mxu0  ;;  %v2980_v19 = vpop.f32.mrb[60].mxu1 }
 0x23c   : > { %v2941_v18 = vadd.f32 %v2940_v17, %v2901_v13  ;;  %v2942_v20 = vpop.f32.mrb[61].mxu0  ;;  %v2982_v23 = vpop.f32.mrb[61].mxu1 }
 0x23d   : > { %v2943_v24 = vpop.f32.mrb[62].mxu0  ;;  %v2983_v26 = vpop.f32.mrb[62].mxu1 }
 0x23e   : > { %v2981_v25 = vadd.f32 %v2980_v19, %v2941_v18  ;;  %v2944_v27 = vpop.f32.mrb[63].mxu0  ;;  %v2984_v28 = vpop.f32.mrb[63].mxu1 }
 0x240   : > { %v2986_v29 = vadd.f32 %v2981_v25, %v465_v21 }
 0x242   : > { %2988 = vst.msk [vmem:[#allocation3] sm:$0x3] %vm2987_vm1, %v2986_v29 }
 0x243   : > { %3247 = shalt.err (!%p3244_p3)
}
 0x244   : > { %s3248_s17 = scalar_lea.hbm %s3843_s3, 32 }
 0x245   : > { %p3249_p4 = scmp.ne.s32.totalorder %s3843_s3, %s3248_s17  ;;  %p3254_p7 = scmp.lt.u32.totalorder %s3248_s17, %s3843_s3 }
 0x247   : > { %p3250_p5 = pnand %p3249_p4, %p3198_p10 }
 0x249   : > { %p3251_p6 = pneg %p3250_p5 }
 0x24b   : > { %p3256_p8 = pnand %p3254_p7, %p3251_p6 }
 0x24d   : > { %3259 = shalt.err (!%p3256_p8)
}
 0x24e   : > { %3195 = dma.vmem_to_hbm [thread:$0]  (%p3198_p10), %s2997_s10, 32, %s3843_s3, [#allocation4]  }
 0x24f   : > { %3273 = dma.done.wait (%p3198_p10), [#allocation4], 32  }
 0x250   : > { %3275 = vsyncadd (%p3198_p10), [#allocation4], 4294967264 }
 0x251 PF: > { %p11_p9 = scmp.ge.s32.totalorder %s3329_s16, 4   ;;  %s3844_s12 = smov %s3282_s13 }
 0x252   : > { %s3845_s13 = smov %s3338_s19  ;;  %s3846_s14 = smov %s3329_s16 }
 0x253   :  { %13 = sbr.rel (!%p11_p9) target bundleno = 2 (0x2), region = 94 }
 0x25a   :  { %3009 = vsyncpa [#allocation4], 1 }
 0x25b   :  { %3011 = vsyncpa [#allocation4 + $0x1], 1 }

</bundles_post_ra>
